<compile_context>
chip_gen: v5e
topology: v5e:2x2
jax: 0.10.0
libtpu: 0.0.40
codegen_flags: <defaults>
</compile_context>

<pallas_src>
import math

import jax
import jax.numpy as jnp
import numpy as np
from jax import lax
from jax.experimental import pallas as pl
from jax.experimental.pallas import tpu as pltpu

_SUBLANE = 8
_MAX_BATCH_TILE = 128
_MAX_TIME_CHUNK = 128
_VMEM_BUDGET = 40 * 1024 * 1024


def _round_up(x, m):
    return ((x + m - 1) // m) * m


def _vmem_bytes_estimate(num_layers, Tc, Bt, I, H):
    """Rough lane-padded VMEM footprint of one kernel instance (conservative)."""
    lane = 128
    pad = lambda c: _round_up(max(int(c), 1), lane)
    N = Tc * Bt
    gates = N * pad(4 * H) * 4                     # f32 gate slab
    hid = N * pad(H) * 4                           # hidden slab (counted as f32)
    state = 2 * num_layers * _round_up(Bt, 8) * pad(H) * 4
    x_blk = 2 * N * pad(I) * 2                     # double-buffered bf16 input block
    o_blk = 2 * 8 * pad(N) * 4                     # double-buffered (1, N) f32 out block
    return gates + hid + state + x_blk + o_blk


# -----------------------------------------------------------------------------
# Fused Pallas kernel: LSTM stack + MLP head for one (batch-tile, time-chunk).
# -----------------------------------------------------------------------------
def _make_live_trading_kernel(num_layers, Tc, Bt, H):
    """Ref layout (in order):
      x_ref                          (Tc*Bt, I)  bf16, rows ordered t*Bt + b
      per layer l: w_ih_t (in,4H) bf16 | w_hh_t (H,4H) bf16 | bias (1,4H) f32
      fc1_w_t (H,H) bf16 | fc1_b (1,H) f32 | fc2_col (H,1) f32 | fc2_b (1,1) f32
      out_ref                        (1, Tc*Bt)  f32   lane-dense head output
      gates_ref                      (Tc*Bt, 4H) f32   VMEM scratch
      hid_ref                        (Tc*Bt, H)  bf16/f32 VMEM scratch
      hst_ref / cst_ref              (L, Bt, H)  f32   carry across time chunks
    Gate order follows PyTorch: [i, f, g, o].
    """

    def kernel(*refs):
        x_ref = refs[0]
        layer_refs = refs[1:1 + 3 * num_layers]
        fc1_w_ref, fc1_b_ref, fc2_col_ref, fc2_b_ref = refs[
            1 + 3 * num_layers:5 + 3 * num_layers]
        out_ref = refs[5 + 3 * num_layers]
        gates_ref = refs[6 + 3 * num_layers]
        hid_ref = refs[7 + 3 * num_layers]
        hst_ref = refs[8 + 3 * num_layers]
        cst_ref = refs[9 + 3 * num_layers]

        # New batch tile (first time chunk) -> reset the carried LSTM state.
        @pl.when(pl.program_id(1) == 0)
        def _():
            hst_ref[...] = jnp.zeros_like(hst_ref)
            cst_ref[...] = jnp.zeros_like(cst_ref)

        for layer in range(num_layers):
            w_ih_ref = layer_refs[3 * layer + 0]
            w_hh_ref = layer_refs[3 * layer + 1]
            b_ref = layer_refs[3 * layer + 2]

            # Hoisted input projection + bias: one big MXU matmul over all
            # timesteps of this chunk; only h @ W_hh stays on the serial path.
            if layer == 0:
                xin = x_ref[...]                                    # bf16 (N, I)
            else:
                xin = hid_ref[...].astype(jnp.bfloat16)             # bf16 (N, H)
            gates_ref[...] = (
                jnp.dot(xin, w_ih_ref[...],
                        preferred_element_type=jnp.float32)
                + b_ref[...]
            )

            w_hh = w_hh_ref[...]  # (H, 4H) bf16, loop-invariant

            def step(t, carry):
                h, c = carry
                row = pl.multiple_of(t * Bt, Bt)
                g = gates_ref[pl.ds(row, Bt), :] + jnp.dot(
                    h.astype(jnp.bfloat16), w_hh,
                    preferred_element_type=jnp.float32)             # (Bt, 4H) f32
                # One full-width sigmoid + one narrow tanh (no iota mask).
                sig = jax.nn.sigmoid(g)
                i_g = sig[:, 0:H]
                f_g = sig[:, H:2 * H]
                o_g = sig[:, 3 * H:4 * H]
                g_g = jnp.tanh(g[:, 2 * H:3 * H])
                c_new = f_g * c + i_g * g_g
                h_new = o_g * jnp.tanh(c_new)
                hid_ref[pl.ds(row, Bt), :] = h_new.astype(hid_ref.dtype)
                return (h_new, c_new)

            h0 = hst_ref[layer]
            c0 = cst_ref[layer]
            h_fin, c_fin = lax.fori_loop(0, Tc, step, (h0, c0),
                                         unroll=min(8, Tc))
            hst_ref[layer] = h_fin
            cst_ref[layer] = c_fin

        # Fused MLP head on the full (Tc*Bt, H) hidden slab:
        #   Linear(H,H) -> ReLU -> Linear(H,1) -> ReLU
        hid = hid_ref[...].astype(jnp.bfloat16)
        h1 = jnp.dot(hid, fc1_w_ref[...],
                     preferred_element_type=jnp.float32) + fc1_b_ref[...]
        h1 = jnp.maximum(h1, 0.0)                                   # (N, H) f32
        # fc2 (single output feature): transpose + VPU multiply + sublane
        # reduce -> lane-dense (1, N) row (no degenerate MXU call, no masked
        # single-lane stores).
        h1t = jnp.transpose(h1)                                     # (H, N) f32
        y = jnp.sum(h1t * fc2_col_ref[...], axis=0, keepdims=True) + fc2_b_ref[...]
        out_ref[...] = jnp.maximum(y, 0.0).astype(out_ref.dtype)

    return kernel


# -----------------------------------------------------------------------------
# Parameter handling
# -----------------------------------------------------------------------------
def init_params(key, lstm_input_size, lstm_hidden_size, num_layers):
    """PyTorch-layout params, uniform(-1/sqrt(H), 1/sqrt(H)) like nn.LSTM."""
    H = lstm_hidden_size
    bound = 1.0 / math.sqrt(H)
    params = {"lstm": []}

    def u(key, shape):
        return jax.random.uniform(key, shape, jnp.float32, -bound, bound)

    for layer in range(num_layers):
        in_size = lstm_input_size if layer == 0 else H
        key, k1, k2, k3, k4 = jax.random.split(key, 5)
        params["lstm"].append({
            "w_ih": u(k1, (4 * H, in_size)),   # PyTorch layout (4H, in)
            "w_hh": u(k2, (4 * H, H)),
            "b_ih": u(k3, (4 * H,)),
            "b_hh": u(k4, (4 * H,)),
        })

    key, k1, k2, k3, k4 = jax.random.split(key, 5)
    params["fc1_w"] = u(k1, (H, H))            # Linear layout (out, in)
    params["fc1_b"] = u(k2, (H,))
    params["fc2_w"] = u(k3, (1, H))
    params["fc2_b"] = u(k4, (1,))
    return params


def prepare_params(params):
    """One-time weight prep: transpose, combine biases, cast matmul weights to bf16."""
    prep = {"lstm": []}
    for lp in params["lstm"]:
        prep["lstm"].append({
            "w_ih_t": jnp.transpose(lp["w_ih"]).astype(jnp.bfloat16),   # (in, 4H)
            "w_hh_t": jnp.transpose(lp["w_hh"]).astype(jnp.bfloat16),   # (H, 4H)
            "bias": (lp["b_ih"] + lp["b_hh"])[None, :].astype(jnp.float32),
        })
    prep["fc1_w_t"] = jnp.transpose(params["fc1_w"]).astype(jnp.bfloat16)  # (H, H)
    prep["fc1_b"] = params["fc1_b"][None, :].astype(jnp.float32)           # (1, H)
    prep["fc2_col"] = jnp.transpose(params["fc2_w"]).astype(jnp.float32)   # (H, 1)
    prep["fc2_b"] = params["fc2_b"][None, :].astype(jnp.float32)           # (1, 1)
    return prep


# -----------------------------------------------------------------------------
# Forward pass
# -----------------------------------------------------------------------------
@jax.jit
def live_trading_forward(prep, x):
    """x: (B, T, I) float32 (batch_first). Returns (B, T, 1) float32."""
    B, T, I = x.shape
    H = prep["fc1_w_t"].shape[0]
    num_layers = len(prep["lstm"])

    # ---- Batch tiling: fat tiles, but >= 2 tiles when free (v7x megacore). ----
    B8 = _round_up(B, _SUBLANE)
    G = -(-B8 // _MAX_BATCH_TILE)
    if G == 1 and B8 >= 2 * _SUBLANE and (B8 // 2) % _SUBLANE == 0:
        G = 2
    Bt = _round_up(-(-B8 // G), _SUBLANE)
    B_pad = G * Bt

    # ---- Time chunking: bounds VMEM independently of T. ----
    Tc = max(1, min(T, _MAX_TIME_CHUNK))
    while Tc > 1 and _vmem_bytes_estimate(num_layers, Tc, Bt, I, H) > _VMEM_BUDGET:
        Tc = max(1, Tc // 2)
    C = -(-T // Tc)
    Tc = -(-T // C)            # minimal-padding chunk length
    T_pad = C * Tc
    N = Tc * Bt

    # bf16 hidden slab only when per-step store offsets stay aligned to the
    # 16-row bf16 sublane tile; otherwise fall back to f32 (still correct).
    hid_dtype = jnp.bfloat16 if Bt % 16 == 0 else jnp.float32

    # ---- Input layout: (B,T,I) -> (G, C, Tc*Bt, I) with rows t*Bt + b. ----
    xp = x.astype(jnp.float32)
    if (B_pad != B) or (T_pad != T):
        xp = jnp.pad(xp, ((0, B_pad - B), (0, T_pad - T), (0, 0)))
    xp = xp.reshape(G, Bt, C, Tc, I)
    xp = jnp.transpose(xp, (0, 2, 3, 1, 4)).reshape(G, C, N, I)
    xp = xp.astype(jnp.bfloat16)

    inputs = [xp]
    in_specs = [pl.BlockSpec((None, None, N, I), lambda g, c: (g, c, 0, 0))]
    for lp in prep["lstm"]:
        for w in (lp["w_ih_t"], lp["w_hh_t"], lp["bias"]):
            inputs.append(w)
            in_specs.append(pl.BlockSpec(w.shape, lambda g, c: (0, 0)))
    for w in (prep["fc1_w_t"], prep["fc1_b"], prep["fc2_col"], prep["fc2_b"]):
        inputs.append(w)
        in_specs.append(pl.BlockSpec(w.shape, lambda g, c: (0, 0)))

    weight_bytes = sum(int(np.prod(w.shape)) * w.dtype.itemsize for w in inputs[1:])
    est = _vmem_bytes_estimate(num_layers, Tc, Bt, I, H)
    vmem_limit = int(min(max(est * 5 // 4 + 4 * weight_bytes + (4 << 20), 32 << 20),
                         96 << 20))

    rows_total = B_pad * T_pad
    in_sizes = [I] + [H] * (num_layers - 1)
    flops = sum(2 * rows_total * (s + H) * 4 * H for s in in_sizes)
    flops += 2 * rows_total * H * H + 2 * rows_total * H
    cost = pl.CostEstimate(
        flops=int(flops),
        transcendentals=int(rows_total * num_layers * 6 * H),
        bytes_accessed=int(xp.size * 2 + rows_total * 4 + weight_bytes),
    )

    kernel = _make_live_trading_kernel(num_layers, Tc, Bt, H)
    out = pl.pallas_call(
        kernel,
        out_shape=jax.ShapeDtypeStruct((G, C, 1, N), jnp.float32),
        grid_spec=pltpu.PrefetchScalarGridSpec(
            num_scalar_prefetch=0,
            grid=(G, C),
            in_specs=in_specs,
            out_specs=pl.BlockSpec((None, None, 1, N), lambda g, c: (g, c, 0, 0)),
            scratch_shapes=[
                pltpu.VMEM((N, 4 * H), jnp.float32),           # x-proj gate slab
                pltpu.VMEM((N, H), hid_dtype),                 # per-layer hidden slab
                pltpu.VMEM((num_layers, Bt, H), jnp.float32),  # h carry across chunks
                pltpu.VMEM((num_layers, Bt, H), jnp.float32),  # c carry across chunks
            ],
        ),
        compiler_params=pltpu.CompilerParams(
            dimension_semantics=("parallel", "arbitrary"),
            vmem_limit_bytes=vmem_limit,
        ),
        cost_estimate=cost,
    )(*inputs)

    # (G, C, 1, Tc*Bt) -> (B_pad, T_pad) -> drop padding -> (B, T, 1).
    out = out.reshape(G, C, Tc, Bt)
    out = jnp.transpose(out, (0, 3, 1, 2)).reshape(B_pad, T_pad)
    return out[:B, :T][..., None]


# -----------------------------------------------------------------------------
# Pure-JAX float32 reference (mirrors the PyTorch module) for sanity checking.
# -----------------------------------------------------------------------------
def _reference_forward(params, x):
    B, T, _ = x.shape
    seq = x.astype(jnp.float32)
    for lp in params["lstm"]:
        H = lp["w_hh"].shape[1]
        w_ih_t = lp["w_ih"].T
        w_hh_t = lp["w_hh"].T
        bias = lp["b_ih"] + lp["b_hh"]

        def step(carry, x_t):
            h, c = carry
            gates = x_t @ w_ih_t + h @ w_hh_t + bias
            i = jax.nn.sigmoid(gates[:, 0:H])
            f = jax.nn.sigmoid(gates[:, H:2 * H])
            g = jnp.tanh(gates[:, 2 * H:3 * H])
            o = jax.nn.sigmoid(gates[:, 3 * H:4 * H])
            c = f * c + i * g
            h = o * jnp.tanh(c)
            return (h, c), h

        h0 = jnp.zeros((B, H), jnp.float32)
        c0 = jnp.zeros((B, H), jnp.float32)
        _, hs = lax.scan(step, (h0, c0), jnp.transpose(seq, (1, 0, 2)))
        seq = jnp.transpose(hs, (1, 0, 2))
    z = jnp.maximum(seq @ params["fc1_w"].T + params["fc1_b"], 0.0)
    return jnp.maximum(z @ params["fc2_w"].T + params["fc2_b"], 0.0)


if __name__ == "__main__":
    lstm_input_size = 16
    lstm_hidden_size = 32
    num_layers = 2
    B, T = 2, 8

    key = jax.random.PRNGKey(0)
    key_params, key_x = jax.random.split(key)
    params = init_params(key_params, lstm_input_size, lstm_hidden_size, num_layers)
    prep = prepare_params(params)
    x = jax.random.normal(key_x, (B, T, lstm_input_size), jnp.float32)

    out = live_trading_forward(prep, x)
    out = jax.block_until_ready(out)
    assert out.shape == (B, T, 1), out.shape

    ref = _reference_forward(params, x)
    np.testing.assert_allclose(np.asarray(out), np.asarray(ref),
                               rtol=5e-2, atol=5e-2)
    print("KERNEL_OK")
</pallas_src>

<mosaic_0001>
module attributes {stable_mosaic.version = 11 : i64} {
  func.func @kernel(%arg0: i32, %arg1: i32, %arg2: memref<1x1x64x16xbf16, #tpu.memory_space<vmem>>, %arg3: memref<16x128xbf16, #tpu.memory_space<vmem>>, %arg4: memref<32x128xbf16, #tpu.memory_space<vmem>>, %arg5: memref<1x128xf32, #tpu.memory_space<vmem>>, %arg6: memref<32x128xbf16, #tpu.memory_space<vmem>>, %arg7: memref<32x128xbf16, #tpu.memory_space<vmem>>, %arg8: memref<1x128xf32, #tpu.memory_space<vmem>>, %arg9: memref<32x32xbf16, #tpu.memory_space<vmem>>, %arg10: memref<1x32xf32, #tpu.memory_space<vmem>>, %arg11: memref<32x1xf32, #tpu.memory_space<vmem>>, %arg12: memref<1x1xf32, #tpu.memory_space<vmem>>, %arg13: memref<1x1x1x64xf32, #tpu.memory_space<vmem>>, %arg14: memref<64x128xf32, #tpu.memory_space<vmem>>, %arg15: memref<64x32xf32, #tpu.memory_space<vmem>>, %arg16: memref<2x8x32xf32, #tpu.memory_space<vmem>>, %arg17: memref<2x8x32xf32, #tpu.memory_space<vmem>>) attributes {dimension_semantics = [#tpu.dimension_semantics<parallel>, #tpu.dimension_semantics<arbitrary>], iteration_bounds = array<i64: 1, 1>, scalar_prefetch = 0 : i64, scratch_operands = 4 : i64, tpu.core_type = #tpu.core_type<tc>, window_params = [{transform_indices = @transform_0, window_bounds = array<i64: 1, 1, 64, 16>}, {pipeline_mode = #tpu.pipeline_mode<synchronous>, transform_indices = @transform_1, window_bounds = array<i64: 16, 128>}, {pipeline_mode = #tpu.pipeline_mode<synchronous>, transform_indices = @transform_2, window_bounds = array<i64: 32, 128>}, {pipeline_mode = #tpu.pipeline_mode<synchronous>, transform_indices = @transform_3, window_bounds = array<i64: 1, 128>}, {pipeline_mode = #tpu.pipeline_mode<synchronous>, transform_indices = @transform_4, window_bounds = array<i64: 32, 128>}, {pipeline_mode = #tpu.pipeline_mode<synchronous>, transform_indices = @transform_5, window_bounds = array<i64: 32, 128>}, {pipeline_mode = #tpu.pipeline_mode<synchronous>, transform_indices = @transform_6, window_bounds = array<i64: 1, 128>}, {pipeline_mode = #tpu.pipeline_mode<synchronous>, transform_indices = @transform_7, window_bounds = array<i64: 32, 32>}, {pipeline_mode = #tpu.pipeline_mode<synchronous>, transform_indices = @transform_8, window_bounds = array<i64: 1, 32>}, {pipeline_mode = #tpu.pipeline_mode<synchronous>, transform_indices = @transform_9, window_bounds = array<i64: 32, 1>}, {pipeline_mode = #tpu.pipeline_mode<synchronous>, transform_indices = @transform_10, window_bounds = array<i64: 1, 1>}, {transform_indices = @transform_11, window_bounds = array<i64: 1, 1, 1, 64>}]} {
    %c0_i32 = arith.constant 0 : i32
    %0 = arith.cmpi eq, %arg1, %c0_i32 : i32
    %1 = arith.extui %0 : i1 to i32
    %c0_i32_0 = arith.constant 0 : i32
    %2 = arith.cmpi ne, %1, %c0_i32_0 : i32
    scf.if %2 {
      %cst_154 = arith.constant 0.000000e+00 : f32
      %448 = vector.broadcast %cst_154 : f32 to vector<2x8x32xf32>
      %c0_155 = arith.constant 0 : index
      %c0_156 = arith.constant 0 : index
      %c0_157 = arith.constant 0 : index
      %449 = vector.load %arg16[%c0_155, %c0_156, %c0_157] : memref<2x8x32xf32, #tpu.memory_space<vmem>>, vector<2x8x32xf32>
      tpu.vector_store %arg16[%c0_155, %c0_156, %c0_157], %448 {strides = array<i32>} : memref<2x8x32xf32, #tpu.memory_space<vmem>>, vector<2x8x32xf32>,
      %cst_158 = arith.constant 0.000000e+00 : f32
      %450 = vector.broadcast %cst_158 : f32 to vector<2x8x32xf32>
      %c0_159 = arith.constant 0 : index
      %c0_160 = arith.constant 0 : index
      %c0_161 = arith.constant 0 : index
      %451 = vector.load %arg17[%c0_159, %c0_160, %c0_161] : memref<2x8x32xf32, #tpu.memory_space<vmem>>, vector<2x8x32xf32>
      tpu.vector_store %arg17[%c0_159, %c0_160, %c0_161], %450 {strides = array<i32>} : memref<2x8x32xf32, #tpu.memory_space<vmem>>, vector<2x8x32xf32>,
    } else {
    }
    %c0 = arith.constant 0 : index
    %c0_1 = arith.constant 0 : index
    %c0_2 = arith.constant 0 : index
    %c0_3 = arith.constant 0 : index
    %3 = vector.load %arg2[%c0, %c0_1, %c0_2, %c0_3] : memref<1x1x64x16xbf16, #tpu.memory_space<vmem>>, vector<1x1x64x16xbf16>
    %4 = vector.shape_cast %3 : vector<1x1x64x16xbf16> to vector<64x16xbf16>
    %c0_4 = arith.constant 0 : index
    %c0_5 = arith.constant 0 : index
    %5 = vector.load %arg3[%c0_4, %c0_5] : memref<16x128xbf16, #tpu.memory_space<vmem>>, vector<16x128xbf16>
    %cst = arith.constant dense<0.000000e+00> : vector<64x128xf32>
    %6 = tpu.matmul %4, %5, %cst {dimension_numbers = #tpu.dot_dimension_numbers<[1], [0], [0], [1], [0, 0, 1, 1], [], []>} : vector<64x16xbf16>, vector<16x128xbf16>, vector<64x128xf32> -> vector<64x128xf32>
    %c0_6 = arith.constant 0 : index
    %c0_7 = arith.constant 0 : index
    %7 = vector.load %arg5[%c0_6, %c0_7] : memref<1x128xf32, #tpu.memory_space<vmem>>, vector<1x128xf32>
    %8 = vector.broadcast %7 : vector<1x128xf32> to vector<64x128xf32>
    %9 = arith.addf %6, %8 : vector<64x128xf32>
    %c0_8 = arith.constant 0 : index
    %c0_9 = arith.constant 0 : index
    %10 = vector.load %arg14[%c0_8, %c0_9] : memref<64x128xf32, #tpu.memory_space<vmem>>, vector<64x128xf32>
    tpu.vector_store %arg14[%c0_8, %c0_9], %9 {strides = array<i32>} : memref<64x128xf32, #tpu.memory_space<vmem>>, vector<64x128xf32>,
    %c0_10 = arith.constant 0 : index
    %c0_11 = arith.constant 0 : index
    %11 = vector.load %arg4[%c0_10, %c0_11] : memref<32x128xbf16, #tpu.memory_space<vmem>>, vector<32x128xbf16>
    %c0_12 = arith.constant 0 : index
    %c0_13 = arith.constant 0 : index
    %c0_14 = arith.constant 0 : index
    %12 = vector.load %arg16[%c0_12, %c0_13, %c0_14] : memref<2x8x32xf32, #tpu.memory_space<vmem>>, vector<1x8x32xf32>
    %13 = vector.shape_cast %12 : vector<1x8x32xf32> to vector<8x32xf32>
    %c0_15 = arith.constant 0 : index
    %c0_16 = arith.constant 0 : index
    %c0_17 = arith.constant 0 : index
    %14 = vector.load %arg17[%c0_15, %c0_16, %c0_17] : memref<2x8x32xf32, #tpu.memory_space<vmem>>, vector<1x8x32xf32>
    %15 = vector.shape_cast %14 : vector<1x8x32xf32> to vector<8x32xf32>
    %c0_i32_18 = arith.constant 0 : i32
    %c8_i32 = arith.constant 8 : i32
    %16 = arith.muli %c0_i32_18, %c8_i32 : i32
    %17 = tpu.assume_multiple %16, 8 : i32
    %18 = arith.index_cast %17 : i32 to index
    %c0_19 = arith.constant 0 : index
    %19 = vector.load %arg14[%18, %c0_19] : memref<64x128xf32, #tpu.memory_space<vmem>>, vector<8x128xf32>
    %20 = arith.truncf %13 : vector<8x32xf32> to vector<8x32xbf16>
    %cst_20 = arith.constant dense<0.000000e+00> : vector<8x128xf32>
    %21 = tpu.matmul %20, %11, %cst_20 {dimension_numbers = #tpu.dot_dimension_numbers<[1], [0], [0], [1], [0, 0, 1, 1], [], []>} : vector<8x32xbf16>, vector<32x128xbf16>, vector<8x128xf32> -> vector<8x128xf32>
    %22 = arith.addf %19, %21 : vector<8x128xf32>
    %23 = arith.negf %22 : vector<8x128xf32>
    %24 = math.exp %23 : vector<8x128xf32>
    %cst_21 = arith.constant 1.000000e+00 : f32
    %25 = vector.broadcast %cst_21 : f32 to vector<8x128xf32>
    %26 = arith.addf %25, %24 : vector<8x128xf32>
    %27 = arith.divf %25, %26 : vector<8x128xf32>
    %28 = vector.extract_strided_slice %27 {offsets = [0, 0], sizes = [8, 32], strides = [1, 1]} : vector<8x128xf32> to vector<8x32xf32>
    %29 = vector.extract_strided_slice %27 {offsets = [0, 32], sizes = [8, 32], strides = [1, 1]} : vector<8x128xf32> to vector<8x32xf32>
    %30 = vector.extract_strided_slice %27 {offsets = [0, 96], sizes = [8, 32], strides = [1, 1]} : vector<8x128xf32> to vector<8x32xf32>
    %31 = vector.extract_strided_slice %22 {offsets = [0, 64], sizes = [8, 32], strides = [1, 1]} : vector<8x128xf32> to vector<8x32xf32>
    %32 = math.tanh %31 : vector<8x32xf32>
    %33 = arith.mulf %29, %15 : vector<8x32xf32>
    %34 = arith.mulf %28, %32 : vector<8x32xf32>
    %35 = arith.addf %33, %34 : vector<8x32xf32>
    %36 = math.tanh %35 : vector<8x32xf32>
    %37 = arith.mulf %30, %36 : vector<8x32xf32>
    %38 = arith.index_cast %17 : i32 to index
    %c0_22 = arith.constant 0 : index
    %39 = vector.load %arg15[%38, %c0_22] : memref<64x32xf32, #tpu.memory_space<vmem>>, vector<8x32xf32>
    tpu.vector_store %arg15[%38, %c0_22], %37 {strides = array<i32>} : memref<64x32xf32, #tpu.memory_space<vmem>>, vector<8x32xf32>,
    %c1_i32 = arith.constant 1 : i32
    %c8_i32_23 = arith.constant 8 : i32
    %40 = arith.muli %c1_i32, %c8_i32_23 : i32
    %41 = tpu.assume_multiple %40, 8 : i32
    %42 = arith.index_cast %41 : i32 to index
    %c0_24 = arith.constant 0 : index
    %43 = vector.load %arg14[%42, %c0_24] : memref<64x128xf32, #tpu.memory_space<vmem>>, vector<8x128xf32>
    %44 = arith.truncf %37 : vector<8x32xf32> to vector<8x32xbf16>
    %cst_25 = arith.constant dense<0.000000e+00> : vector<8x128xf32>
    %45 = tpu.matmul %44, %11, %cst_25 {dimension_numbers = #tpu.dot_dimension_numbers<[1], [0], [0], [1], [0, 0, 1, 1], [], []>} : vector<8x32xbf16>, vector<32x128xbf16>, vector<8x128xf32> -> vector<8x128xf32>
    %46 = arith.addf %43, %45 : vector<8x128xf32>
    %47 = arith.negf %46 : vector<8x128xf32>
    %48 = math.exp %47 : vector<8x128xf32>
    %cst_26 = arith.constant 1.000000e+00 : f32
    %49 = vector.broadcast %cst_26 : f32 to vector<8x128xf32>
    %50 = arith.addf %49, %48 : vector<8x128xf32>
    %51 = arith.divf %49, %50 : vector<8x128xf32>
    %52 = vector.extract_strided_slice %51 {offsets = [0, 0], sizes = [8, 32], strides = [1, 1]} : vector<8x128xf32> to vector<8x32xf32>
    %53 = vector.extract_strided_slice %51 {offsets = [0, 32], sizes = [8, 32], strides = [1, 1]} : vector<8x128xf32> to vector<8x32xf32>
    %54 = vector.extract_strided_slice %51 {offsets = [0, 96], sizes = [8, 32], strides = [1, 1]} : vector<8x128xf32> to vector<8x32xf32>
    %55 = vector.extract_strided_slice %46 {offsets = [0, 64], sizes = [8, 32], strides = [1, 1]} : vector<8x128xf32> to vector<8x32xf32>
    %56 = math.tanh %55 : vector<8x32xf32>
    %57 = arith.mulf %53, %35 : vector<8x32xf32>
    %58 = arith.mulf %52, %56 : vector<8x32xf32>
    %59 = arith.addf %57, %58 : vector<8x32xf32>
    %60 = math.tanh %59 : vector<8x32xf32>
    %61 = arith.mulf %54, %60 : vector<8x32xf32>
    %62 = arith.index_cast %41 : i32 to index
    %c0_27 = arith.constant 0 : index
    %63 = vector.load %arg15[%62, %c0_27] : memref<64x32xf32, #tpu.memory_space<vmem>>, vector<8x32xf32>
    tpu.vector_store %arg15[%62, %c0_27], %61 {strides = array<i32>} : memref<64x32xf32, #tpu.memory_space<vmem>>, vector<8x32xf32>,
    %c2_i32 = arith.constant 2 : i32
    %c8_i32_28 = arith.constant 8 : i32
    %64 = arith.muli %c2_i32, %c8_i32_28 : i32
    %65 = tpu.assume_multiple %64, 8 : i32
    %66 = arith.index_cast %65 : i32 to index
    %c0_29 = arith.constant 0 : index
    %67 = vector.load %arg14[%66, %c0_29] : memref<64x128xf32, #tpu.memory_space<vmem>>, vector<8x128xf32>
    %68 = arith.truncf %61 : vector<8x32xf32> to vector<8x32xbf16>
    %cst_30 = arith.constant dense<0.000000e+00> : vector<8x128xf32>
    %69 = tpu.matmul %68, %11, %cst_30 {dimension_numbers = #tpu.dot_dimension_numbers<[1], [0], [0], [1], [0, 0, 1, 1], [], []>} : vector<8x32xbf16>, vector<32x128xbf16>, vector<8x128xf32> -> vector<8x128xf32>
    %70 = arith.addf %67, %69 : vector<8x128xf32>
    %71 = arith.negf %70 : vector<8x128xf32>
    %72 = math.exp %71 : vector<8x128xf32>
    %cst_31 = arith.constant 1.000000e+00 : f32
    %73 = vector.broadcast %cst_31 : f32 to vector<8x128xf32>
    %74 = arith.addf %73, %72 : vector<8x128xf32>
    %75 = arith.divf %73, %74 : vector<8x128xf32>
    %76 = vector.extract_strided_slice %75 {offsets = [0, 0], sizes = [8, 32], strides = [1, 1]} : vector<8x128xf32> to vector<8x32xf32>
    %77 = vector.extract_strided_slice %75 {offsets = [0, 32], sizes = [8, 32], strides = [1, 1]} : vector<8x128xf32> to vector<8x32xf32>
    %78 = vector.extract_strided_slice %75 {offsets = [0, 96], sizes = [8, 32], strides = [1, 1]} : vector<8x128xf32> to vector<8x32xf32>
    %79 = vector.extract_strided_slice %70 {offsets = [0, 64], sizes = [8, 32], strides = [1, 1]} : vector<8x128xf32> to vector<8x32xf32>
    %80 = math.tanh %79 : vector<8x32xf32>
    %81 = arith.mulf %77, %59 : vector<8x32xf32>
    %82 = arith.mulf %76, %80 : vector<8x32xf32>
    %83 = arith.addf %81, %82 : vector<8x32xf32>
    %84 = math.tanh %83 : vector<8x32xf32>
    %85 = arith.mulf %78, %84 : vector<8x32xf32>
    %86 = arith.index_cast %65 : i32 to index
    %c0_32 = arith.constant 0 : index
    %87 = vector.load %arg15[%86, %c0_32] : memref<64x32xf32, #tpu.memory_space<vmem>>, vector<8x32xf32>
    tpu.vector_store %arg15[%86, %c0_32], %85 {strides = array<i32>} : memref<64x32xf32, #tpu.memory_space<vmem>>, vector<8x32xf32>,
    %c3_i32 = arith.constant 3 : i32
    %c8_i32_33 = arith.constant 8 : i32
    %88 = arith.muli %c3_i32, %c8_i32_33 : i32
    %89 = tpu.assume_multiple %88, 8 : i32
    %90 = arith.index_cast %89 : i32 to index
    %c0_34 = arith.constant 0 : index
    %91 = vector.load %arg14[%90, %c0_34] : memref<64x128xf32, #tpu.memory_space<vmem>>, vector<8x128xf32>
    %92 = arith.truncf %85 : vector<8x32xf32> to vector<8x32xbf16>
    %cst_35 = arith.constant dense<0.000000e+00> : vector<8x128xf32>
    %93 = tpu.matmul %92, %11, %cst_35 {dimension_numbers = #tpu.dot_dimension_numbers<[1], [0], [0], [1], [0, 0, 1, 1], [], []>} : vector<8x32xbf16>, vector<32x128xbf16>, vector<8x128xf32> -> vector<8x128xf32>
    %94 = arith.addf %91, %93 : vector<8x128xf32>
    %95 = arith.negf %94 : vector<8x128xf32>
    %96 = math.exp %95 : vector<8x128xf32>
    %cst_36 = arith.constant 1.000000e+00 : f32
    %97 = vector.broadcast %cst_36 : f32 to vector<8x128xf32>
    %98 = arith.addf %97, %96 : vector<8x128xf32>
    %99 = arith.divf %97, %98 : vector<8x128xf32>
    %100 = vector.extract_strided_slice %99 {offsets = [0, 0], sizes = [8, 32], strides = [1, 1]} : vector<8x128xf32> to vector<8x32xf32>
    %101 = vector.extract_strided_slice %99 {offsets = [0, 32], sizes = [8, 32], strides = [1, 1]} : vector<8x128xf32> to vector<8x32xf32>
    %102 = vector.extract_strided_slice %99 {offsets = [0, 96], sizes = [8, 32], strides = [1, 1]} : vector<8x128xf32> to vector<8x32xf32>
    %103 = vector.extract_strided_slice %94 {offsets = [0, 64], sizes = [8, 32], strides = [1, 1]} : vector<8x128xf32> to vector<8x32xf32>
    %104 = math.tanh %103 : vector<8x32xf32>
    %105 = arith.mulf %101, %83 : vector<8x32xf32>
    %106 = arith.mulf %100, %104 : vector<8x32xf32>
    %107 = arith.addf %105, %106 : vector<8x32xf32>
    %108 = math.tanh %107 : vector<8x32xf32>
    %109 = arith.mulf %102, %108 : vector<8x32xf32>
    %110 = arith.index_cast %89 : i32 to index
    %c0_37 = arith.constant 0 : index
    %111 = vector.load %arg15[%110, %c0_37] : memref<64x32xf32, #tpu.memory_space<vmem>>, vector<8x32xf32>
    tpu.vector_store %arg15[%110, %c0_37], %109 {strides = array<i32>} : memref<64x32xf32, #tpu.memory_space<vmem>>, vector<8x32xf32>,
    %c4_i32 = arith.constant 4 : i32
    %c8_i32_38 = arith.constant 8 : i32
    %112 = arith.muli %c4_i32, %c8_i32_38 : i32
    %113 = tpu.assume_multiple %112, 8 : i32
    %114 = arith.index_cast %113 : i32 to index
    %c0_39 = arith.constant 0 : index
    %115 = vector.load %arg14[%114, %c0_39] : memref<64x128xf32, #tpu.memory_space<vmem>>, vector<8x128xf32>
    %116 = arith.truncf %109 : vector<8x32xf32> to vector<8x32xbf16>
    %cst_40 = arith.constant dense<0.000000e+00> : vector<8x128xf32>
    %117 = tpu.matmul %116, %11, %cst_40 {dimension_numbers = #tpu.dot_dimension_numbers<[1], [0], [0], [1], [0, 0, 1, 1], [], []>} : vector<8x32xbf16>, vector<32x128xbf16>, vector<8x128xf32> -> vector<8x128xf32>
    %118 = arith.addf %115, %117 : vector<8x128xf32>
    %119 = arith.negf %118 : vector<8x128xf32>
    %120 = math.exp %119 : vector<8x128xf32>
    %cst_41 = arith.constant 1.000000e+00 : f32
    %121 = vector.broadcast %cst_41 : f32 to vector<8x128xf32>
    %122 = arith.addf %121, %120 : vector<8x128xf32>
    %123 = arith.divf %121, %122 : vector<8x128xf32>
    %124 = vector.extract_strided_slice %123 {offsets = [0, 0], sizes = [8, 32], strides = [1, 1]} : vector<8x128xf32> to vector<8x32xf32>
    %125 = vector.extract_strided_slice %123 {offsets = [0, 32], sizes = [8, 32], strides = [1, 1]} : vector<8x128xf32> to vector<8x32xf32>
    %126 = vector.extract_strided_slice %123 {offsets = [0, 96], sizes = [8, 32], strides = [1, 1]} : vector<8x128xf32> to vector<8x32xf32>
    %127 = vector.extract_strided_slice %118 {offsets = [0, 64], sizes = [8, 32], strides = [1, 1]} : vector<8x128xf32> to vector<8x32xf32>
    %128 = math.tanh %127 : vector<8x32xf32>
    %129 = arith.mulf %125, %107 : vector<8x32xf32>
    %130 = arith.mulf %124, %128 : vector<8x32xf32>
    %131 = arith.addf %129, %130 : vector<8x32xf32>
    %132 = math.tanh %131 : vector<8x32xf32>
    %133 = arith.mulf %126, %132 : vector<8x32xf32>
    %134 = arith.index_cast %113 : i32 to index
    %c0_42 = arith.constant 0 : index
    %135 = vector.load %arg15[%134, %c0_42] : memref<64x32xf32, #tpu.memory_space<vmem>>, vector<8x32xf32>
    tpu.vector_store %arg15[%134, %c0_42], %133 {strides = array<i32>} : memref<64x32xf32, #tpu.memory_space<vmem>>, vector<8x32xf32>,
    %c5_i32 = arith.constant 5 : i32
    %c8_i32_43 = arith.constant 8 : i32
    %136 = arith.muli %c5_i32, %c8_i32_43 : i32
    %137 = tpu.assume_multiple %136, 8 : i32
    %138 = arith.index_cast %137 : i32 to index
    %c0_44 = arith.constant 0 : index
    %139 = vector.load %arg14[%138, %c0_44] : memref<64x128xf32, #tpu.memory_space<vmem>>, vector<8x128xf32>
    %140 = arith.truncf %133 : vector<8x32xf32> to vector<8x32xbf16>
    %cst_45 = arith.constant dense<0.000000e+00> : vector<8x128xf32>
    %141 = tpu.matmul %140, %11, %cst_45 {dimension_numbers = #tpu.dot_dimension_numbers<[1], [0], [0], [1], [0, 0, 1, 1], [], []>} : vector<8x32xbf16>, vector<32x128xbf16>, vector<8x128xf32> -> vector<8x128xf32>
    %142 = arith.addf %139, %141 : vector<8x128xf32>
    %143 = arith.negf %142 : vector<8x128xf32>
    %144 = math.exp %143 : vector<8x128xf32>
    %cst_46 = arith.constant 1.000000e+00 : f32
    %145 = vector.broadcast %cst_46 : f32 to vector<8x128xf32>
    %146 = arith.addf %145, %144 : vector<8x128xf32>
    %147 = arith.divf %145, %146 : vector<8x128xf32>
    %148 = vector.extract_strided_slice %147 {offsets = [0, 0], sizes = [8, 32], strides = [1, 1]} : vector<8x128xf32> to vector<8x32xf32>
    %149 = vector.extract_strided_slice %147 {offsets = [0, 32], sizes = [8, 32], strides = [1, 1]} : vector<8x128xf32> to vector<8x32xf32>
    %150 = vector.extract_strided_slice %147 {offsets = [0, 96], sizes = [8, 32], strides = [1, 1]} : vector<8x128xf32> to vector<8x32xf32>
    %151 = vector.extract_strided_slice %142 {offsets = [0, 64], sizes = [8, 32], strides = [1, 1]} : vector<8x128xf32> to vector<8x32xf32>
    %152 = math.tanh %151 : vector<8x32xf32>
    %153 = arith.mulf %149, %131 : vector<8x32xf32>
    %154 = arith.mulf %148, %152 : vector<8x32xf32>
    %155 = arith.addf %153, %154 : vector<8x32xf32>
    %156 = math.tanh %155 : vector<8x32xf32>
    %157 = arith.mulf %150, %156 : vector<8x32xf32>
    %158 = arith.index_cast %137 : i32 to index
    %c0_47 = arith.constant 0 : index
    %159 = vector.load %arg15[%158, %c0_47] : memref<64x32xf32, #tpu.memory_space<vmem>>, vector<8x32xf32>
    tpu.vector_store %arg15[%158, %c0_47], %157 {strides = array<i32>} : memref<64x32xf32, #tpu.memory_space<vmem>>, vector<8x32xf32>,
    %c6_i32 = arith.constant 6 : i32
    %c8_i32_48 = arith.constant 8 : i32
    %160 = arith.muli %c6_i32, %c8_i32_48 : i32
    %161 = tpu.assume_multiple %160, 8 : i32
    %162 = arith.index_cast %161 : i32 to index
    %c0_49 = arith.constant 0 : index
    %163 = vector.load %arg14[%162, %c0_49] : memref<64x128xf32, #tpu.memory_space<vmem>>, vector<8x128xf32>
    %164 = arith.truncf %157 : vector<8x32xf32> to vector<8x32xbf16>
    %cst_50 = arith.constant dense<0.000000e+00> : vector<8x128xf32>
    %165 = tpu.matmul %164, %11, %cst_50 {dimension_numbers = #tpu.dot_dimension_numbers<[1], [0], [0], [1], [0, 0, 1, 1], [], []>} : vector<8x32xbf16>, vector<32x128xbf16>, vector<8x128xf32> -> vector<8x128xf32>
    %166 = arith.addf %163, %165 : vector<8x128xf32>
    %167 = arith.negf %166 : vector<8x128xf32>
    %168 = math.exp %167 : vector<8x128xf32>
    %cst_51 = arith.constant 1.000000e+00 : f32
    %169 = vector.broadcast %cst_51 : f32 to vector<8x128xf32>
    %170 = arith.addf %169, %168 : vector<8x128xf32>
    %171 = arith.divf %169, %170 : vector<8x128xf32>
    %172 = vector.extract_strided_slice %171 {offsets = [0, 0], sizes = [8, 32], strides = [1, 1]} : vector<8x128xf32> to vector<8x32xf32>
    %173 = vector.extract_strided_slice %171 {offsets = [0, 32], sizes = [8, 32], strides = [1, 1]} : vector<8x128xf32> to vector<8x32xf32>
    %174 = vector.extract_strided_slice %171 {offsets = [0, 96], sizes = [8, 32], strides = [1, 1]} : vector<8x128xf32> to vector<8x32xf32>
    %175 = vector.extract_strided_slice %166 {offsets = [0, 64], sizes = [8, 32], strides = [1, 1]} : vector<8x128xf32> to vector<8x32xf32>
    %176 = math.tanh %175 : vector<8x32xf32>
    %177 = arith.mulf %173, %155 : vector<8x32xf32>
    %178 = arith.mulf %172, %176 : vector<8x32xf32>
    %179 = arith.addf %177, %178 : vector<8x32xf32>
    %180 = math.tanh %179 : vector<8x32xf32>
    %181 = arith.mulf %174, %180 : vector<8x32xf32>
    %182 = arith.index_cast %161 : i32 to index
    %c0_52 = arith.constant 0 : index
    %183 = vector.load %arg15[%182, %c0_52] : memref<64x32xf32, #tpu.memory_space<vmem>>, vector<8x32xf32>
    tpu.vector_store %arg15[%182, %c0_52], %181 {strides = array<i32>} : memref<64x32xf32, #tpu.memory_space<vmem>>, vector<8x32xf32>,
    %c7_i32 = arith.constant 7 : i32
    %c8_i32_53 = arith.constant 8 : i32
    %184 = arith.muli %c7_i32, %c8_i32_53 : i32
    %185 = tpu.assume_multiple %184, 8 : i32
    %186 = arith.index_cast %185 : i32 to index
    %c0_54 = arith.constant 0 : index
    %187 = vector.load %arg14[%186, %c0_54] : memref<64x128xf32, #tpu.memory_space<vmem>>, vector<8x128xf32>
    %188 = arith.truncf %181 : vector<8x32xf32> to vector<8x32xbf16>
    %cst_55 = arith.constant dense<0.000000e+00> : vector<8x128xf32>
    %189 = tpu.matmul %188, %11, %cst_55 {dimension_numbers = #tpu.dot_dimension_numbers<[1], [0], [0], [1], [0, 0, 1, 1], [], []>} : vector<8x32xbf16>, vector<32x128xbf16>, vector<8x128xf32> -> vector<8x128xf32>
    %190 = arith.addf %187, %189 : vector<8x128xf32>
    %191 = arith.negf %190 : vector<8x128xf32>
    %192 = math.exp %191 : vector<8x128xf32>
    %cst_56 = arith.constant 1.000000e+00 : f32
    %193 = vector.broadcast %cst_56 : f32 to vector<8x128xf32>
    %194 = arith.addf %193, %192 : vector<8x128xf32>
    %195 = arith.divf %193, %194 : vector<8x128xf32>
    %196 = vector.extract_strided_slice %195 {offsets = [0, 0], sizes = [8, 32], strides = [1, 1]} : vector<8x128xf32> to vector<8x32xf32>
    %197 = vector.extract_strided_slice %195 {offsets = [0, 32], sizes = [8, 32], strides = [1, 1]} : vector<8x128xf32> to vector<8x32xf32>
    %198 = vector.extract_strided_slice %195 {offsets = [0, 96], sizes = [8, 32], strides = [1, 1]} : vector<8x128xf32> to vector<8x32xf32>
    %199 = vector.extract_strided_slice %190 {offsets = [0, 64], sizes = [8, 32], strides = [1, 1]} : vector<8x128xf32> to vector<8x32xf32>
    %200 = math.tanh %199 : vector<8x32xf32>
    %201 = arith.mulf %197, %179 : vector<8x32xf32>
    %202 = arith.mulf %196, %200 : vector<8x32xf32>
    %203 = arith.addf %201, %202 : vector<8x32xf32>
    %204 = math.tanh %203 : vector<8x32xf32>
    %205 = arith.mulf %198, %204 : vector<8x32xf32>
    %206 = arith.index_cast %185 : i32 to index
    %c0_57 = arith.constant 0 : index
    %207 = vector.load %arg15[%206, %c0_57] : memref<64x32xf32, #tpu.memory_space<vmem>>, vector<8x32xf32>
    tpu.vector_store %arg15[%206, %c0_57], %205 {strides = array<i32>} : memref<64x32xf32, #tpu.memory_space<vmem>>, vector<8x32xf32>,
    %c8_i32_58 = arith.constant 8 : i32
    %c0_59 = arith.constant 0 : index
    %c0_60 = arith.constant 0 : index
    %c0_61 = arith.constant 0 : index
    %208 = vector.load %arg16[%c0_59, %c0_60, %c0_61] : memref<2x8x32xf32, #tpu.memory_space<vmem>>, vector<1x8x32xf32>
    %209 = vector.shape_cast %208 : vector<1x8x32xf32> to vector<8x32xf32>
    %210 = vector.shape_cast %205 : vector<8x32xf32> to vector<1x8x32xf32>
    tpu.vector_store %arg16[%c0_59, %c0_60, %c0_61], %210 {strides = array<i32>} : memref<2x8x32xf32, #tpu.memory_space<vmem>>, vector<1x8x32xf32>,
    %c0_62 = arith.constant 0 : index
    %c0_63 = arith.constant 0 : index
    %c0_64 = arith.constant 0 : index
    %211 = vector.load %arg17[%c0_62, %c0_63, %c0_64] : memref<2x8x32xf32, #tpu.memory_space<vmem>>, vector<1x8x32xf32>
    %212 = vector.shape_cast %211 : vector<1x8x32xf32> to vector<8x32xf32>
    %213 = vector.shape_cast %203 : vector<8x32xf32> to vector<1x8x32xf32>
    tpu.vector_store %arg17[%c0_62, %c0_63, %c0_64], %213 {strides = array<i32>} : memref<2x8x32xf32, #tpu.memory_space<vmem>>, vector<1x8x32xf32>,
    %c0_65 = arith.constant 0 : index
    %c0_66 = arith.constant 0 : index
    %214 = vector.load %arg15[%c0_65, %c0_66] : memref<64x32xf32, #tpu.memory_space<vmem>>, vector<64x32xf32>
    %215 = arith.truncf %214 : vector<64x32xf32> to vector<64x32xbf16>
    %c0_67 = arith.constant 0 : index
    %c0_68 = arith.constant 0 : index
    %216 = vector.load %arg6[%c0_67, %c0_68] : memref<32x128xbf16, #tpu.memory_space<vmem>>, vector<32x128xbf16>
    %cst_69 = arith.constant dense<0.000000e+00> : vector<64x128xf32>
    %217 = tpu.matmul %215, %216, %cst_69 {dimension_numbers = #tpu.dot_dimension_numbers<[1], [0], [0], [1], [0, 0, 1, 1], [], []>} : vector<64x32xbf16>, vector<32x128xbf16>, vector<64x128xf32> -> vector<64x128xf32>
    %c0_70 = arith.constant 0 : index
    %c0_71 = arith.constant 0 : index
    %218 = vector.load %arg8[%c0_70, %c0_71] : memref<1x128xf32, #tpu.memory_space<vmem>>, vector<1x128xf32>
    %219 = vector.broadcast %218 : vector<1x128xf32> to vector<64x128xf32>
    %220 = arith.addf %217, %219 : vector<64x128xf32>
    %c0_72 = arith.constant 0 : index
    %c0_73 = arith.constant 0 : index
    %221 = vector.load %arg14[%c0_72, %c0_73] : memref<64x128xf32, #tpu.memory_space<vmem>>, vector<64x128xf32>
    tpu.vector_store %arg14[%c0_72, %c0_73], %220 {strides = array<i32>} : memref<64x128xf32, #tpu.memory_space<vmem>>, vector<64x128xf32>,
    %c0_74 = arith.constant 0 : index
    %c0_75 = arith.constant 0 : index
    %222 = vector.load %arg7[%c0_74, %c0_75] : memref<32x128xbf16, #tpu.memory_space<vmem>>, vector<32x128xbf16>
    %c1 = arith.constant 1 : index
    %c0_76 = arith.constant 0 : index
    %c0_77 = arith.constant 0 : index
    %223 = vector.load %arg16[%c1, %c0_76, %c0_77] : memref<2x8x32xf32, #tpu.memory_space<vmem>>, vector<1x8x32xf32>
    %224 = vector.shape_cast %223 : vector<1x8x32xf32> to vector<8x32xf32>
    %c1_78 = arith.constant 1 : index
    %c0_79 = arith.constant 0 : index
    %c0_80 = arith.constant 0 : index
    %225 = vector.load %arg17[%c1_78, %c0_79, %c0_80] : memref<2x8x32xf32, #tpu.memory_space<vmem>>, vector<1x8x32xf32>
    %226 = vector.shape_cast %225 : vector<1x8x32xf32> to vector<8x32xf32>
    %c0_i32_81 = arith.constant 0 : i32
    %c8_i32_82 = arith.constant 8 : i32
    %227 = arith.muli %c0_i32_81, %c8_i32_82 : i32
    %228 = tpu.assume_multiple %227, 8 : i32
    %229 = arith.index_cast %228 : i32 to index
    %c0_83 = arith.constant 0 : index
    %230 = vector.load %arg14[%229, %c0_83] : memref<64x128xf32, #tpu.memory_space<vmem>>, vector<8x128xf32>
    %231 = arith.truncf %224 : vector<8x32xf32> to vector<8x32xbf16>
    %cst_84 = arith.constant dense<0.000000e+00> : vector<8x128xf32>
    %232 = tpu.matmul %231, %222, %cst_84 {dimension_numbers = #tpu.dot_dimension_numbers<[1], [0], [0], [1], [0, 0, 1, 1], [], []>} : vector<8x32xbf16>, vector<32x128xbf16>, vector<8x128xf32> -> vector<8x128xf32>
    %233 = arith.addf %230, %232 : vector<8x128xf32>
    %234 = arith.negf %233 : vector<8x128xf32>
    %235 = math.exp %234 : vector<8x128xf32>
    %cst_85 = arith.constant 1.000000e+00 : f32
    %236 = vector.broadcast %cst_85 : f32 to vector<8x128xf32>
    %237 = arith.addf %236, %235 : vector<8x128xf32>
    %238 = arith.divf %236, %237 : vector<8x128xf32>
    %239 = vector.extract_strided_slice %238 {offsets = [0, 0], sizes = [8, 32], strides = [1, 1]} : vector<8x128xf32> to vector<8x32xf32>
    %240 = vector.extract_strided_slice %238 {offsets = [0, 32], sizes = [8, 32], strides = [1, 1]} : vector<8x128xf32> to vector<8x32xf32>
    %241 = vector.extract_strided_slice %238 {offsets = [0, 96], sizes = [8, 32], strides = [1, 1]} : vector<8x128xf32> to vector<8x32xf32>
    %242 = vector.extract_strided_slice %233 {offsets = [0, 64], sizes = [8, 32], strides = [1, 1]} : vector<8x128xf32> to vector<8x32xf32>
    %243 = math.tanh %242 : vector<8x32xf32>
    %244 = arith.mulf %240, %226 : vector<8x32xf32>
    %245 = arith.mulf %239, %243 : vector<8x32xf32>
    %246 = arith.addf %244, %245 : vector<8x32xf32>
    %247 = math.tanh %246 : vector<8x32xf32>
    %248 = arith.mulf %241, %247 : vector<8x32xf32>
    %249 = arith.index_cast %228 : i32 to index
    %c0_86 = arith.constant 0 : index
    %250 = vector.load %arg15[%249, %c0_86] : memref<64x32xf32, #tpu.memory_space<vmem>>, vector<8x32xf32>
    tpu.vector_store %arg15[%249, %c0_86], %248 {strides = array<i32>} : memref<64x32xf32, #tpu.memory_space<vmem>>, vector<8x32xf32>,
    %c1_i32_87 = arith.constant 1 : i32
    %c8_i32_88 = arith.constant 8 : i32
    %251 = arith.muli %c1_i32_87, %c8_i32_88 : i32
    %252 = tpu.assume_multiple %251, 8 : i32
    %253 = arith.index_cast %252 : i32 to index
    %c0_89 = arith.constant 0 : index
    %254 = vector.load %arg14[%253, %c0_89] : memref<64x128xf32, #tpu.memory_space<vmem>>, vector<8x128xf32>
    %255 = arith.truncf %248 : vector<8x32xf32> to vector<8x32xbf16>
    %cst_90 = arith.constant dense<0.000000e+00> : vector<8x128xf32>
    %256 = tpu.matmul %255, %222, %cst_90 {dimension_numbers = #tpu.dot_dimension_numbers<[1], [0], [0], [1], [0, 0, 1, 1], [], []>} : vector<8x32xbf16>, vector<32x128xbf16>, vector<8x128xf32> -> vector<8x128xf32>
    %257 = arith.addf %254, %256 : vector<8x128xf32>
    %258 = arith.negf %257 : vector<8x128xf32>
    %259 = math.exp %258 : vector<8x128xf32>
    %cst_91 = arith.constant 1.000000e+00 : f32
    %260 = vector.broadcast %cst_91 : f32 to vector<8x128xf32>
    %261 = arith.addf %260, %259 : vector<8x128xf32>
    %262 = arith.divf %260, %261 : vector<8x128xf32>
    %263 = vector.extract_strided_slice %262 {offsets = [0, 0], sizes = [8, 32], strides = [1, 1]} : vector<8x128xf32> to vector<8x32xf32>
    %264 = vector.extract_strided_slice %262 {offsets = [0, 32], sizes = [8, 32], strides = [1, 1]} : vector<8x128xf32> to vector<8x32xf32>
    %265 = vector.extract_strided_slice %262 {offsets = [0, 96], sizes = [8, 32], strides = [1, 1]} : vector<8x128xf32> to vector<8x32xf32>
    %266 = vector.extract_strided_slice %257 {offsets = [0, 64], sizes = [8, 32], strides = [1, 1]} : vector<8x128xf32> to vector<8x32xf32>
    %267 = math.tanh %266 : vector<8x32xf32>
    %268 = arith.mulf %264, %246 : vector<8x32xf32>
    %269 = arith.mulf %263, %267 : vector<8x32xf32>
    %270 = arith.addf %268, %269 : vector<8x32xf32>
    %271 = math.tanh %270 : vector<8x32xf32>
    %272 = arith.mulf %265, %271 : vector<8x32xf32>
    %273 = arith.index_cast %252 : i32 to index
    %c0_92 = arith.constant 0 : index
    %274 = vector.load %arg15[%273, %c0_92] : memref<64x32xf32, #tpu.memory_space<vmem>>, vector<8x32xf32>
    tpu.vector_store %arg15[%273, %c0_92], %272 {strides = array<i32>} : memref<64x32xf32, #tpu.memory_space<vmem>>, vector<8x32xf32>,
    %c2_i32_93 = arith.constant 2 : i32
    %c8_i32_94 = arith.constant 8 : i32
    %275 = arith.muli %c2_i32_93, %c8_i32_94 : i32
    %276 = tpu.assume_multiple %275, 8 : i32
    %277 = arith.index_cast %276 : i32 to index
    %c0_95 = arith.constant 0 : index
    %278 = vector.load %arg14[%277, %c0_95] : memref<64x128xf32, #tpu.memory_space<vmem>>, vector<8x128xf32>
    %279 = arith.truncf %272 : vector<8x32xf32> to vector<8x32xbf16>
    %cst_96 = arith.constant dense<0.000000e+00> : vector<8x128xf32>
    %280 = tpu.matmul %279, %222, %cst_96 {dimension_numbers = #tpu.dot_dimension_numbers<[1], [0], [0], [1], [0, 0, 1, 1], [], []>} : vector<8x32xbf16>, vector<32x128xbf16>, vector<8x128xf32> -> vector<8x128xf32>
    %281 = arith.addf %278, %280 : vector<8x128xf32>
    %282 = arith.negf %281 : vector<8x128xf32>
    %283 = math.exp %282 : vector<8x128xf32>
    %cst_97 = arith.constant 1.000000e+00 : f32
    %284 = vector.broadcast %cst_97 : f32 to vector<8x128xf32>
    %285 = arith.addf %284, %283 : vector<8x128xf32>
    %286 = arith.divf %284, %285 : vector<8x128xf32>
    %287 = vector.extract_strided_slice %286 {offsets = [0, 0], sizes = [8, 32], strides = [1, 1]} : vector<8x128xf32> to vector<8x32xf32>
    %288 = vector.extract_strided_slice %286 {offsets = [0, 32], sizes = [8, 32], strides = [1, 1]} : vector<8x128xf32> to vector<8x32xf32>
    %289 = vector.extract_strided_slice %286 {offsets = [0, 96], sizes = [8, 32], strides = [1, 1]} : vector<8x128xf32> to vector<8x32xf32>
    %290 = vector.extract_strided_slice %281 {offsets = [0, 64], sizes = [8, 32], strides = [1, 1]} : vector<8x128xf32> to vector<8x32xf32>
    %291 = math.tanh %290 : vector<8x32xf32>
    %292 = arith.mulf %288, %270 : vector<8x32xf32>
    %293 = arith.mulf %287, %291 : vector<8x32xf32>
    %294 = arith.addf %292, %293 : vector<8x32xf32>
    %295 = math.tanh %294 : vector<8x32xf32>
    %296 = arith.mulf %289, %295 : vector<8x32xf32>
    %297 = arith.index_cast %276 : i32 to index
    %c0_98 = arith.constant 0 : index
    %298 = vector.load %arg15[%297, %c0_98] : memref<64x32xf32, #tpu.memory_space<vmem>>, vector<8x32xf32>
    tpu.vector_store %arg15[%297, %c0_98], %296 {strides = array<i32>} : memref<64x32xf32, #tpu.memory_space<vmem>>, vector<8x32xf32>,
    %c3_i32_99 = arith.constant 3 : i32
    %c8_i32_100 = arith.constant 8 : i32
    %299 = arith.muli %c3_i32_99, %c8_i32_100 : i32
    %300 = tpu.assume_multiple %299, 8 : i32
    %301 = arith.index_cast %300 : i32 to index
    %c0_101 = arith.constant 0 : index
    %302 = vector.load %arg14[%301, %c0_101] : memref<64x128xf32, #tpu.memory_space<vmem>>, vector<8x128xf32>
    %303 = arith.truncf %296 : vector<8x32xf32> to vector<8x32xbf16>
    %cst_102 = arith.constant dense<0.000000e+00> : vector<8x128xf32>
    %304 = tpu.matmul %303, %222, %cst_102 {dimension_numbers = #tpu.dot_dimension_numbers<[1], [0], [0], [1], [0, 0, 1, 1], [], []>} : vector<8x32xbf16>, vector<32x128xbf16>, vector<8x128xf32> -> vector<8x128xf32>
    %305 = arith.addf %302, %304 : vector<8x128xf32>
    %306 = arith.negf %305 : vector<8x128xf32>
    %307 = math.exp %306 : vector<8x128xf32>
    %cst_103 = arith.constant 1.000000e+00 : f32
    %308 = vector.broadcast %cst_103 : f32 to vector<8x128xf32>
    %309 = arith.addf %308, %307 : vector<8x128xf32>
    %310 = arith.divf %308, %309 : vector<8x128xf32>
    %311 = vector.extract_strided_slice %310 {offsets = [0, 0], sizes = [8, 32], strides = [1, 1]} : vector<8x128xf32> to vector<8x32xf32>
    %312 = vector.extract_strided_slice %310 {offsets = [0, 32], sizes = [8, 32], strides = [1, 1]} : vector<8x128xf32> to vector<8x32xf32>
    %313 = vector.extract_strided_slice %310 {offsets = [0, 96], sizes = [8, 32], strides = [1, 1]} : vector<8x128xf32> to vector<8x32xf32>
    %314 = vector.extract_strided_slice %305 {offsets = [0, 64], sizes = [8, 32], strides = [1, 1]} : vector<8x128xf32> to vector<8x32xf32>
    %315 = math.tanh %314 : vector<8x32xf32>
    %316 = arith.mulf %312, %294 : vector<8x32xf32>
    %317 = arith.mulf %311, %315 : vector<8x32xf32>
    %318 = arith.addf %316, %317 : vector<8x32xf32>
    %319 = math.tanh %318 : vector<8x32xf32>
    %320 = arith.mulf %313, %319 : vector<8x32xf32>
    %321 = arith.index_cast %300 : i32 to index
    %c0_104 = arith.constant 0 : index
    %322 = vector.load %arg15[%321, %c0_104] : memref<64x32xf32, #tpu.memory_space<vmem>>, vector<8x32xf32>
    tpu.vector_store %arg15[%321, %c0_104], %320 {strides = array<i32>} : memref<64x32xf32, #tpu.memory_space<vmem>>, vector<8x32xf32>,
    %c4_i32_105 = arith.constant 4 : i32
    %c8_i32_106 = arith.constant 8 : i32
    %323 = arith.muli %c4_i32_105, %c8_i32_106 : i32
    %324 = tpu.assume_multiple %323, 8 : i32
    %325 = arith.index_cast %324 : i32 to index
    %c0_107 = arith.constant 0 : index
    %326 = vector.load %arg14[%325, %c0_107] : memref<64x128xf32, #tpu.memory_space<vmem>>, vector<8x128xf32>
    %327 = arith.truncf %320 : vector<8x32xf32> to vector<8x32xbf16>
    %cst_108 = arith.constant dense<0.000000e+00> : vector<8x128xf32>
    %328 = tpu.matmul %327, %222, %cst_108 {dimension_numbers = #tpu.dot_dimension_numbers<[1], [0], [0], [1], [0, 0, 1, 1], [], []>} : vector<8x32xbf16>, vector<32x128xbf16>, vector<8x128xf32> -> vector<8x128xf32>
    %329 = arith.addf %326, %328 : vector<8x128xf32>
    %330 = arith.negf %329 : vector<8x128xf32>
    %331 = math.exp %330 : vector<8x128xf32>
    %cst_109 = arith.constant 1.000000e+00 : f32
    %332 = vector.broadcast %cst_109 : f32 to vector<8x128xf32>
    %333 = arith.addf %332, %331 : vector<8x128xf32>
    %334 = arith.divf %332, %333 : vector<8x128xf32>
    %335 = vector.extract_strided_slice %334 {offsets = [0, 0], sizes = [8, 32], strides = [1, 1]} : vector<8x128xf32> to vector<8x32xf32>
    %336 = vector.extract_strided_slice %334 {offsets = [0, 32], sizes = [8, 32], strides = [1, 1]} : vector<8x128xf32> to vector<8x32xf32>
    %337 = vector.extract_strided_slice %334 {offsets = [0, 96], sizes = [8, 32], strides = [1, 1]} : vector<8x128xf32> to vector<8x32xf32>
    %338 = vector.extract_strided_slice %329 {offsets = [0, 64], sizes = [8, 32], strides = [1, 1]} : vector<8x128xf32> to vector<8x32xf32>
    %339 = math.tanh %338 : vector<8x32xf32>
    %340 = arith.mulf %336, %318 : vector<8x32xf32>
    %341 = arith.mulf %335, %339 : vector<8x32xf32>
    %342 = arith.addf %340, %341 : vector<8x32xf32>
    %343 = math.tanh %342 : vector<8x32xf32>
    %344 = arith.mulf %337, %343 : vector<8x32xf32>
    %345 = arith.index_cast %324 : i32 to index
    %c0_110 = arith.constant 0 : index
    %346 = vector.load %arg15[%345, %c0_110] : memref<64x32xf32, #tpu.memory_space<vmem>>, vector<8x32xf32>
    tpu.vector_store %arg15[%345, %c0_110], %344 {strides = array<i32>} : memref<64x32xf32, #tpu.memory_space<vmem>>, vector<8x32xf32>,
    %c5_i32_111 = arith.constant 5 : i32
    %c8_i32_112 = arith.constant 8 : i32
    %347 = arith.muli %c5_i32_111, %c8_i32_112 : i32
    %348 = tpu.assume_multiple %347, 8 : i32
    %349 = arith.index_cast %348 : i32 to index
    %c0_113 = arith.constant 0 : index
    %350 = vector.load %arg14[%349, %c0_113] : memref<64x128xf32, #tpu.memory_space<vmem>>, vector<8x128xf32>
    %351 = arith.truncf %344 : vector<8x32xf32> to vector<8x32xbf16>
    %cst_114 = arith.constant dense<0.000000e+00> : vector<8x128xf32>
    %352 = tpu.matmul %351, %222, %cst_114 {dimension_numbers = #tpu.dot_dimension_numbers<[1], [0], [0], [1], [0, 0, 1, 1], [], []>} : vector<8x32xbf16>, vector<32x128xbf16>, vector<8x128xf32> -> vector<8x128xf32>
    %353 = arith.addf %350, %352 : vector<8x128xf32>
    %354 = arith.negf %353 : vector<8x128xf32>
    %355 = math.exp %354 : vector<8x128xf32>
    %cst_115 = arith.constant 1.000000e+00 : f32
    %356 = vector.broadcast %cst_115 : f32 to vector<8x128xf32>
    %357 = arith.addf %356, %355 : vector<8x128xf32>
    %358 = arith.divf %356, %357 : vector<8x128xf32>
    %359 = vector.extract_strided_slice %358 {offsets = [0, 0], sizes = [8, 32], strides = [1, 1]} : vector<8x128xf32> to vector<8x32xf32>
    %360 = vector.extract_strided_slice %358 {offsets = [0, 32], sizes = [8, 32], strides = [1, 1]} : vector<8x128xf32> to vector<8x32xf32>
    %361 = vector.extract_strided_slice %358 {offsets = [0, 96], sizes = [8, 32], strides = [1, 1]} : vector<8x128xf32> to vector<8x32xf32>
    %362 = vector.extract_strided_slice %353 {offsets = [0, 64], sizes = [8, 32], strides = [1, 1]} : vector<8x128xf32> to vector<8x32xf32>
    %363 = math.tanh %362 : vector<8x32xf32>
    %364 = arith.mulf %360, %342 : vector<8x32xf32>
    %365 = arith.mulf %359, %363 : vector<8x32xf32>
    %366 = arith.addf %364, %365 : vector<8x32xf32>
    %367 = math.tanh %366 : vector<8x32xf32>
    %368 = arith.mulf %361, %367 : vector<8x32xf32>
    %369 = arith.index_cast %348 : i32 to index
    %c0_116 = arith.constant 0 : index
    %370 = vector.load %arg15[%369, %c0_116] : memref<64x32xf32, #tpu.memory_space<vmem>>, vector<8x32xf32>
    tpu.vector_store %arg15[%369, %c0_116], %368 {strides = array<i32>} : memref<64x32xf32, #tpu.memory_space<vmem>>, vector<8x32xf32>,
    %c6_i32_117 = arith.constant 6 : i32
    %c8_i32_118 = arith.constant 8 : i32
    %371 = arith.muli %c6_i32_117, %c8_i32_118 : i32
    %372 = tpu.assume_multiple %371, 8 : i32
    %373 = arith.index_cast %372 : i32 to index
    %c0_119 = arith.constant 0 : index
    %374 = vector.load %arg14[%373, %c0_119] : memref<64x128xf32, #tpu.memory_space<vmem>>, vector<8x128xf32>
    %375 = arith.truncf %368 : vector<8x32xf32> to vector<8x32xbf16>
    %cst_120 = arith.constant dense<0.000000e+00> : vector<8x128xf32>
    %376 = tpu.matmul %375, %222, %cst_120 {dimension_numbers = #tpu.dot_dimension_numbers<[1], [0], [0], [1], [0, 0, 1, 1], [], []>} : vector<8x32xbf16>, vector<32x128xbf16>, vector<8x128xf32> -> vector<8x128xf32>
    %377 = arith.addf %374, %376 : vector<8x128xf32>
    %378 = arith.negf %377 : vector<8x128xf32>
    %379 = math.exp %378 : vector<8x128xf32>
    %cst_121 = arith.constant 1.000000e+00 : f32
    %380 = vector.broadcast %cst_121 : f32 to vector<8x128xf32>
    %381 = arith.addf %380, %379 : vector<8x128xf32>
    %382 = arith.divf %380, %381 : vector<8x128xf32>
    %383 = vector.extract_strided_slice %382 {offsets = [0, 0], sizes = [8, 32], strides = [1, 1]} : vector<8x128xf32> to vector<8x32xf32>
    %384 = vector.extract_strided_slice %382 {offsets = [0, 32], sizes = [8, 32], strides = [1, 1]} : vector<8x128xf32> to vector<8x32xf32>
    %385 = vector.extract_strided_slice %382 {offsets = [0, 96], sizes = [8, 32], strides = [1, 1]} : vector<8x128xf32> to vector<8x32xf32>
    %386 = vector.extract_strided_slice %377 {offsets = [0, 64], sizes = [8, 32], strides = [1, 1]} : vector<8x128xf32> to vector<8x32xf32>
    %387 = math.tanh %386 : vector<8x32xf32>
    %388 = arith.mulf %384, %366 : vector<8x32xf32>
    %389 = arith.mulf %383, %387 : vector<8x32xf32>
    %390 = arith.addf %388, %389 : vector<8x32xf32>
    %391 = math.tanh %390 : vector<8x32xf32>
    %392 = arith.mulf %385, %391 : vector<8x32xf32>
    %393 = arith.index_cast %372 : i32 to index
    %c0_122 = arith.constant 0 : index
    %394 = vector.load %arg15[%393, %c0_122] : memref<64x32xf32, #tpu.memory_space<vmem>>, vector<8x32xf32>
    tpu.vector_store %arg15[%393, %c0_122], %392 {strides = array<i32>} : memref<64x32xf32, #tpu.memory_space<vmem>>, vector<8x32xf32>,
    %c7_i32_123 = arith.constant 7 : i32
    %c8_i32_124 = arith.constant 8 : i32
    %395 = arith.muli %c7_i32_123, %c8_i32_124 : i32
    %396 = tpu.assume_multiple %395, 8 : i32
    %397 = arith.index_cast %396 : i32 to index
    %c0_125 = arith.constant 0 : index
    %398 = vector.load %arg14[%397, %c0_125] : memref<64x128xf32, #tpu.memory_space<vmem>>, vector<8x128xf32>
    %399 = arith.truncf %392 : vector<8x32xf32> to vector<8x32xbf16>
    %cst_126 = arith.constant dense<0.000000e+00> : vector<8x128xf32>
    %400 = tpu.matmul %399, %222, %cst_126 {dimension_numbers = #tpu.dot_dimension_numbers<[1], [0], [0], [1], [0, 0, 1, 1], [], []>} : vector<8x32xbf16>, vector<32x128xbf16>, vector<8x128xf32> -> vector<8x128xf32>
    %401 = arith.addf %398, %400 : vector<8x128xf32>
    %402 = arith.negf %401 : vector<8x128xf32>
    %403 = math.exp %402 : vector<8x128xf32>
    %cst_127 = arith.constant 1.000000e+00 : f32
    %404 = vector.broadcast %cst_127 : f32 to vector<8x128xf32>
    %405 = arith.addf %404, %403 : vector<8x128xf32>
    %406 = arith.divf %404, %405 : vector<8x128xf32>
    %407 = vector.extract_strided_slice %406 {offsets = [0, 0], sizes = [8, 32], strides = [1, 1]} : vector<8x128xf32> to vector<8x32xf32>
    %408 = vector.extract_strided_slice %406 {offsets = [0, 32], sizes = [8, 32], strides = [1, 1]} : vector<8x128xf32> to vector<8x32xf32>
    %409 = vector.extract_strided_slice %406 {offsets = [0, 96], sizes = [8, 32], strides = [1, 1]} : vector<8x128xf32> to vector<8x32xf32>
    %410 = vector.extract_strided_slice %401 {offsets = [0, 64], sizes = [8, 32], strides = [1, 1]} : vector<8x128xf32> to vector<8x32xf32>
    %411 = math.tanh %410 : vector<8x32xf32>
    %412 = arith.mulf %408, %390 : vector<8x32xf32>
    %413 = arith.mulf %407, %411 : vector<8x32xf32>
    %414 = arith.addf %412, %413 : vector<8x32xf32>
    %415 = math.tanh %414 : vector<8x32xf32>
    %416 = arith.mulf %409, %415 : vector<8x32xf32>
    %417 = arith.index_cast %396 : i32 to index
    %c0_128 = arith.constant 0 : index
    %418 = vector.load %arg15[%417, %c0_128] : memref<64x32xf32, #tpu.memory_space<vmem>>, vector<8x32xf32>
    tpu.vector_store %arg15[%417, %c0_128], %416 {strides = array<i32>} : memref<64x32xf32, #tpu.memory_space<vmem>>, vector<8x32xf32>,
    %c8_i32_129 = arith.constant 8 : i32
    %c1_130 = arith.constant 1 : index
    %c0_131 = arith.constant 0 : index
    %c0_132 = arith.constant 0 : index
    %419 = vector.load %arg16[%c1_130, %c0_131, %c0_132] : memref<2x8x32xf32, #tpu.memory_space<vmem>>, vector<1x8x32xf32>
    %420 = vector.shape_cast %419 : vector<1x8x32xf32> to vector<8x32xf32>
    %421 = vector.shape_cast %416 : vector<8x32xf32> to vector<1x8x32xf32>
    tpu.vector_store %arg16[%c1_130, %c0_131, %c0_132], %421 {strides = array<i32>} : memref<2x8x32xf32, #tpu.memory_space<vmem>>, vector<1x8x32xf32>,
    %c1_133 = arith.constant 1 : index
    %c0_134 = arith.constant 0 : index
    %c0_135 = arith.constant 0 : index
    %422 = vector.load %arg17[%c1_133, %c0_134, %c0_135] : memref<2x8x32xf32, #tpu.memory_space<vmem>>, vector<1x8x32xf32>
    %423 = vector.shape_cast %422 : vector<1x8x32xf32> to vector<8x32xf32>
    %424 = vector.shape_cast %414 : vector<8x32xf32> to vector<1x8x32xf32>
    tpu.vector_store %arg17[%c1_133, %c0_134, %c0_135], %424 {strides = array<i32>} : memref<2x8x32xf32, #tpu.memory_space<vmem>>, vector<1x8x32xf32>,
    %c0_136 = arith.constant 0 : index
    %c0_137 = arith.constant 0 : index
    %425 = vector.load %arg15[%c0_136, %c0_137] : memref<64x32xf32, #tpu.memory_space<vmem>>, vector<64x32xf32>
    %426 = arith.truncf %425 : vector<64x32xf32> to vector<64x32xbf16>
    %c0_138 = arith.constant 0 : index
    %c0_139 = arith.constant 0 : index
    %427 = vector.load %arg9[%c0_138, %c0_139] : memref<32x32xbf16, #tpu.memory_space<vmem>>, vector<32x32xbf16>
    %cst_140 = arith.constant dense<0.000000e+00> : vector<64x32xf32>
    %428 = tpu.matmul %426, %427, %cst_140 {dimension_numbers = #tpu.dot_dimension_numbers<[1], [0], [0], [1], [0, 0, 1, 1], [], []>} : vector<64x32xbf16>, vector<32x32xbf16>, vector<64x32xf32> -> vector<64x32xf32>
    %c0_141 = arith.constant 0 : index
    %c0_142 = arith.constant 0 : index
    %429 = vector.load %arg10[%c0_141, %c0_142] : memref<1x32xf32, #tpu.memory_space<vmem>>, vector<1x32xf32>
    %430 = vector.broadcast %429 : vector<1x32xf32> to vector<64x32xf32>
    %431 = arith.addf %428, %430 : vector<64x32xf32>
    %cst_143 = arith.constant 0.000000e+00 : f32
    %432 = vector.broadcast %cst_143 : f32 to vector<64x32xf32>
    %433 = arith.maximumf %431, %432 : vector<64x32xf32>
    %434 = tpu.transpose %433, [1, 0] : vector<64x32xf32> -> vector<32x64xf32>
    %c0_144 = arith.constant 0 : index
    %c0_145 = arith.constant 0 : index
    %435 = vector.load %arg11[%c0_144, %c0_145] : memref<32x1xf32, #tpu.memory_space<vmem>>, vector<32x1xf32>
    %436 = vector.broadcast %435 : vector<32x1xf32> to vector<32x64xf32>
    %437 = arith.mulf %434, %436 : vector<32x64xf32>
    %cst_146 = arith.constant dense<0.000000e+00> : vector<64xf32>
    %438 = vector.multi_reduction <add>, %437, %cst_146 [0] : vector<32x64xf32> to vector<64xf32>
    %439 = vector.shape_cast %438 : vector<64xf32> to vector<1x64xf32>
    %c0_147 = arith.constant 0 : index
    %c0_148 = arith.constant 0 : index
    %440 = vector.load %arg12[%c0_147, %c0_148] : memref<1x1xf32, #tpu.memory_space<vmem>>, vector<1x1xf32>
    %441 = vector.broadcast %440 : vector<1x1xf32> to vector<1x64xf32>
    %442 = arith.addf %439, %441 : vector<1x64xf32>
    %cst_149 = arith.constant 0.000000e+00 : f32
    %443 = vector.broadcast %cst_149 : f32 to vector<1x64xf32>
    %444 = arith.maximumf %442, %443 : vector<1x64xf32>
    %c0_150 = arith.constant 0 : index
    %c0_151 = arith.constant 0 : index
    %c0_152 = arith.constant 0 : index
    %c0_153 = arith.constant 0 : index
    %445 = vector.load %arg13[%c0_150, %c0_151, %c0_152, %c0_153] : memref<1x1x1x64xf32, #tpu.memory_space<vmem>>, vector<1x1x1x64xf32>
    %446 = vector.shape_cast %445 : vector<1x1x1x64xf32> to vector<1x64xf32>
    %447 = vector.shape_cast %444 : vector<1x64xf32> to vector<1x1x1x64xf32>
    tpu.vector_store %arg13[%c0_150, %c0_151, %c0_152, %c0_153], %447 {strides = array<i32>} : memref<1x1x1x64xf32, #tpu.memory_space<vmem>>, vector<1x1x1x64xf32>,
    return
  }
  func.func @transform_0(%arg0: i32, %arg1: i32) -> (i32, i32, i32, i32) {
    %c0_i32 = arith.constant 0 : i32
    %c0_i32_0 = arith.constant 0 : i32
    %c0_i32_1 = arith.constant 0 : i32
    return %arg0, %arg1, %c0_i32, %c0_i32_0 : i32, i32, i32, i32
  }
  func.func @transform_1(%arg0: i32, %arg1: i32) -> (i32, i32) {
    %c0_i32 = arith.constant 0 : i32
    %c0_i32_0 = arith.constant 0 : i32
    %c0_i32_1 = arith.constant 0 : i32
    return %c0_i32, %c0_i32_0 : i32, i32
  }
  func.func @transform_2(%arg0: i32, %arg1: i32) -> (i32, i32) {
    %c0_i32 = arith.constant 0 : i32
    %c0_i32_0 = arith.constant 0 : i32
    %c0_i32_1 = arith.constant 0 : i32
    return %c0_i32, %c0_i32_0 : i32, i32
  }
  func.func @transform_3(%arg0: i32, %arg1: i32) -> (i32, i32) {
    %c0_i32 = arith.constant 0 : i32
    %c0_i32_0 = arith.constant 0 : i32
    %c0_i32_1 = arith.constant 0 : i32
    return %c0_i32, %c0_i32_0 : i32, i32
  }
  func.func @transform_4(%arg0: i32, %arg1: i32) -> (i32, i32) {
    %c0_i32 = arith.constant 0 : i32
    %c0_i32_0 = arith.constant 0 : i32
    %c0_i32_1 = arith.constant 0 : i32
    return %c0_i32, %c0_i32_0 : i32, i32
  }
  func.func @transform_5(%arg0: i32, %arg1: i32) -> (i32, i32) {
    %c0_i32 = arith.constant 0 : i32
    %c0_i32_0 = arith.constant 0 : i32
    %c0_i32_1 = arith.constant 0 : i32
    return %c0_i32, %c0_i32_0 : i32, i32
  }
  func.func @transform_6(%arg0: i32, %arg1: i32) -> (i32, i32) {
    %c0_i32 = arith.constant 0 : i32
    %c0_i32_0 = arith.constant 0 : i32
    %c0_i32_1 = arith.constant 0 : i32
    return %c0_i32, %c0_i32_0 : i32, i32
  }
  func.func @transform_7(%arg0: i32, %arg1: i32) -> (i32, i32) {
    %c0_i32 = arith.constant 0 : i32
    %c0_i32_0 = arith.constant 0 : i32
    %c0_i32_1 = arith.constant 0 : i32
    return %c0_i32, %c0_i32_0 : i32, i32
  }
  func.func @transform_8(%arg0: i32, %arg1: i32) -> (i32, i32) {
    %c0_i32 = arith.constant 0 : i32
    %c0_i32_0 = arith.constant 0 : i32
    %c0_i32_1 = arith.constant 0 : i32
    return %c0_i32, %c0_i32_0 : i32, i32
  }
  func.func @transform_9(%arg0: i32, %arg1: i32) -> (i32, i32) {
    %c0_i32 = arith.constant 0 : i32
    %c0_i32_0 = arith.constant 0 : i32
    %c0_i32_1 = arith.constant 0 : i32
    return %c0_i32, %c0_i32_0 : i32, i32
  }
  func.func @transform_10(%arg0: i32, %arg1: i32) -> (i32, i32) {
    %c0_i32 = arith.constant 0 : i32
    %c0_i32_0 = arith.constant 0 : i32
    %c0_i32_1 = arith.constant 0 : i32
    return %c0_i32, %c0_i32_0 : i32, i32
  }
  func.func @transform_11(%arg0: i32, %arg1: i32) -> (i32, i32, i32, i32) {
    %c0_i32 = arith.constant 0 : i32
    %c0_i32_0 = arith.constant 0 : i32
    %c0_i32_1 = arith.constant 0 : i32
    return %arg0, %arg1, %c0_i32, %c0_i32_0 : i32, i32, i32, i32
  }
}

</mosaic_0001>

<bundles_post_ra>
// kernel: live_trading_forward.1
= control target key start
LH: loop header
LB: loop body
LE: loop exit
PB: predicated region body
PF: predicated region fallthrough
CT: control target
= control target key end

     0   :  { %vm45_vm0 = vcmask 261120   ;;  %v1733_v2 = vmov 0.0   ;;  %vm90_vm1 = vcmask 130048   ;;  %s1734_s27 = smov 64   ;;  %s1735_s28 = smov 32   ;;  %s2161_s1 = inlined_call_operand.vmem [shape: bf16[16,128], index: 1, kind: input, shape index: {}]   ;;  %s2162_s0 = inlined_call_operand.vmem [shape: bf16[1,1,64,16], index: 0, kind: input, shape index: {}]   ;;  %s2163_s2 = inlined_call_operand.vmem [shape: bf16[32,128], index: 2, kind: input, shape index: {}]   ;;  %s2164_s3 = inlined_call_operand.vmem [shape: f32[1,128], index: 3, kind: input, shape index: {}]   ;;  %s2165_s4 = inlined_call_operand.vmem [shape: bf16[32,128], index: 4, kind: input, shape index: {}]   ;;  %s2166_s6 = inlined_call_operand.vmem [shape: f32[1,128], index: 6, kind: input, shape index: {}]   ;;  %s2167_s5 = inlined_call_operand.vmem [shape: bf16[32,128], index: 5, kind: input, shape index: {}]   ;;  %s2168_s7 = inlined_call_operand.vmem [shape: bf16[32,32], index: 7, kind: input, shape index: {}]   ;;  %s2169_s8 = inlined_call_operand.vmem [shape: f32[1,32], index: 8, kind: input, shape index: {}]   ;;  %s2170_s9 = inlined_call_operand.vmem [shape: f32[32,1], index: 9, kind: input, shape index: {}]   ;;  %s2171_s10 = inlined_call_operand.<no memory space> [shape: f32[1,1], index: 10, kind: input, shape index: {}]   ;;  %s2172_s11 = inlined_call_operand.vmem [shape: f32[1,1,1,64], index: 11, kind: output, shape index: {}]  }
   0x1   :  { %v1582_v0 = vld [vmem:[%s2161_s1] sm:$0xff]  ;;  %v1804_v1 = vld [vmem:[%s2163_s2 + $0x8] sm:$0xff]  ;;  %46 = vst.msk [vmem:[#allocation4] sm:$0xff] %vm45_vm0, %v1733_v2  ;;  %v1580_v38 = vld [vmem:[%s2162_s0 + $0x10] sm:$0xff] }
   0x2   :  { %v1579_v3 = vld [vmem:[%s2162_s0 + $0x8] sm:$0xff]  ;;  %v1578_v4 = vld [vmem:[%s2162_s0] sm:$0xff]  ;;  %47 = vst.msk [vmem:[#allocation4 + $0x8] sm:$0xff] %vm45_vm0, %v1733_v2  ;;  %1591 = vmatpush.bf16.msra.mxu1 %v1582_v0  ;;  %110 = vmatpush.bf16.msra.mxu0 %v1582_v0 }
   0x3   :  { %48 = vst.msk [vmem:[#allocation5] sm:$0xff] %vm45_vm0, %v1733_v2  ;;  %v1819_v5 = vld [vmem:[%s2163_s2] sm:$0xff]  ;;  %1592 = vmatpush.bf16.msra.mxu2 %v1582_v0  ;;  %1593 = vmatpush.bf16.msra.mxu3 %v1582_v0 }
   0x4   :  { %49 = vst.msk [vmem:[#allocation5 + $0x8] sm:$0xff] %vm45_vm0, %v1733_v2  ;;  %v1841_v10 = vld [vmem:[%s2164_s3] ss:$0 sm:$0xff] }
   0x5   :  { %1503 = vmatmul.msk.bf16.vlgmr.msra.gmra.mxu1 %vm90_vm1, %v1579_v3  ;;  %1502 = vmatmul.msk.bf16.vlgmr.msra.gmra.mxu0 %vm90_vm1, %v1578_v4 }
   0x6   :  { %170 = vmatpush.bf16.msrb.mxu1 %v1804_v1  ;;  %1504 = vmatmul.msk.bf16.vlgmr.msra.gmra.mxu2 %vm90_vm1, %v1580_v38 }
   0x7   :  { %239 = vmatpush.bf16.msrb.mxu2 %v1804_v1  ;;  %305 = vmatpush.bf16.msrb.mxu3 %v1804_v1 }
   0x8   :  { %v144_v6 = vld [vmem:[#allocation4] sm:$0xff] }
   0x9   :  { %v147_v7 = vpack.c.bf16 %v144_v6, %v144_v6 }
   0xa   :  { %171 = vmatpush.bf16.msrb.mxu1 %v1819_v5  ;;  %v145_v17 = vld [vmem:[#allocation5] sm:$0xff] }
   0xb   :  { %240 = vmatpush.bf16.msrb.mxu2 %v1819_v5  ;;  %306 = vmatpush.bf16.msrb.mxu3 %v1819_v5 }
   0xe   :  { %371 = vmatpush.bf16.msra.mxu1 %v1804_v1 }
   0xf   :  { %437 = vmatpush.bf16.msra.mxu2 %v1804_v1 }
  0x12   :  { %372 = vmatpush.bf16.msra.mxu1 %v1819_v5 }
  0x13   :  { %438 = vmatpush.bf16.msra.mxu2 %v1819_v5 }
  0x15   :  { %1514 = vmatmul.msk.bf16.vlgmr.msrb.gmra.mxu1 %vm45_vm0, %v147_v7 }
  0x16   :  { %569 = vmatpush.bf16.msrb.mxu1 %v1804_v1 }
  0x1a   :  { %570 = vmatpush.bf16.msrb.mxu1 %v1819_v5 }
  0x82   :  { %v1834_v8 = vpop.f32.mrf.mxu1  ;;  %v112_v11 = vpop.f32.mrf.mxu0 }
  0x83   :  { %v113_v12 = vadd.f32 %v1841_v10, %v112_v11  ;;  %v1581_v11 = vld [vmem:[%s2162_s0 + $0x18] sm:$0xff] }
  0x84   :  { %1505 = vmatmul.msk.bf16.vlgmr.msra.gmra.mxu3 %vm90_vm1, %v1581_v11 }
  0x85   :  { %503 = vmatpush.bf16.msra.mxu3 %v1804_v1 }
  0x89   :  { %v1862_v43 = vpop.f32.mrf.mxu2  ;;  %504 = vmatpush.bf16.msra.mxu3 %v1819_v5 }
  0x8a   :  { %v1836_v9 = vpop.f32.mrf.mxu1  ;;  %v114_v45 = vpop.f32.mrf.mxu0 }
  0x8b   :  { %v115_v46 = vadd.f32 %v1841_v10, %v114_v45 }
  0x91   :  { %v1864_v44 = vpop.f32.mrf.mxu2 }
  0x92   :  { %v173_v13 = vpop.f32.mrf.mxu1 }
  0x93   :  { %v177_v14 = vadd.f32 %v173_v13, %v113_v12 }
  0x95   :  { %1604 = vtanh.f32 %v177_v14  ;;  %v1515_v18 = vmul.f32 -1.442695, %v177_v14 }
  0x97   :  { %1606 = vpow2.f32 %v1515_v18 }
  0x9a   :  { %v175_v15 = vpop.f32.mrf.mxu1 }
  0x9b   :  { %v1605_v16 = vpop.eup %1604 }
  0x9c   :  { %204 = vrot.lane.b32.xlu0 %v1605_v16, %s1734_s27 }
  0x9d   :  { %v1607_v19 = vpop.eup %1606 }
  0x9e   :  { %v181_v20 = vadd.f32 1.0, %v1607_v19 }
  0xa0   :  { %1608 = vrcp.f32 %v181_v20  ;;  %v193_v26 = vand.u32 2147483648, %v181_v20  ;;  %vm187_vm3 = vweird.f32 %v181_v20  ;;  %v191_v27 = vand.u32 2147483647, %v181_v20 }
  0xa2   :  { %v194_v29 = vor.u32 1.1754944e-38, %v193_v26  ;;  %vm192_vm5 = vcmp.eq.f32.partialorder %v191_v27, 8.507059e+37 }
  0xa4   :  { %199 = vrot.lane.b32.xlu0 %v145_v17, %s1735_s28 }
  0xa6   :  { %v1609_v21 = vpop.eup %1608 }
  0xa7   :  { %v183_v22 = vmul.f32 %v1609_v21, %v181_v20  ;;  %vm188_vm2 = vweird.f32 %v1609_v21 }
  0xa8   :  { %vm189_vm4 = vmor %vm187_vm3, %vm188_vm2 }
  0xa9   :  { %v184_v23 = vsub.f32 1.0, %v183_v22 }
  0xab   :  { %v185_v24 = vmul.f32 %v1609_v21, %v184_v23 }
  0xad   :  { %v186_v25 = vadd.f32 %v1609_v21, %v185_v24 }
  0xaf   :  { %v190_v28 = vsel %vm189_vm4, %v1609_v21, %v186_v25 }
  0xb0   :  { %v195_v31 = vsel %vm192_vm5, %v194_v29, %v190_v28 }
 0x107   :  { %v1882_v16 = vpop.f32.mrf.mxu3 }
 0x10e   :  { %v205_v30 = vpop.permute.xlu0 %204 }
 0x10f   :  { %v207_v32 = vmul.f32 %v205_v30, %v195_v31  ;;  %v1884_v17 = vpop.f32.mrf.mxu3 }
 0x111   :  { %209 = vrot.lane.b32.xlu1 %v207_v32, %s1735_s28 }
 0x116   :  { %v200_v33 = vpop.permute.xlu0 %199 }
 0x117   :  { %v202_v34 = vmul.f32 %v200_v33, %v195_v31 }
 0x183   :  { %v210_v35 = vpop.permute.xlu1 %209 }
 0x184   :  { %v212_v36 = vadd.f32 %v210_v35, %v202_v34 }
 0x186   :  { %1610 = vtanh.f32 %v212_v36 }
 0x18c   :  { %v1611_v37 = vpop.eup %1610 }
 0x18d   :  { %215 = vrot.lane.b32.xlu1 %v1611_v37, %s1734_s27 }
 0x1ff   :  { %v216_v39 = vpop.permute.xlu1 %215 }
 0x200   :  { %v1854_v40 = vmul.f32 %v216_v39, %v195_v31 }
 0x202   :  { %v226_v41 = vpack.c.bf16 %v1854_v40, %v1854_v40 }
 0x204   :  { %228 = vrot.lane.b32.xlu2 %v226_v41, %s1735_s28 }
 0x25e   :  { %v229_v42 = vpop.permute.xlu2 %228 }
 0x25f   :  { %1516 = vmatmul.msk.bf16.vlgmr.msrb.gmra.mxu2 %vm45_vm0, %v229_v42 }
 0x260   :  { %635 = vmatpush.bf16.msrb.mxu2 %v1804_v1  ;;  %v118_v1 = vadd.f32 %v1841_v10, %v1834_v8 }
 0x264   :  { %636 = vmatpush.bf16.msrb.mxu2 %v1819_v5 }
 0x2e2   :  { %v242_v47 = vpop.f32.mrf.mxu2 }
 0x2e3   :  { %v246_v48 = vadd.f32 %v242_v47, %v115_v46  ;;  %v120_v46 = vadd.f32 %v1841_v10, %v1836_v9 }
 0x2e5   :  { %1612 = vtanh.f32 %v246_v48  ;;  %v1517_v51 = vmul.f32 -1.442695, %v246_v48 }
 0x2e7   :  { %1614 = vpow2.f32 %v1517_v51 }
 0x2ea   :  { %v244_v49 = vpop.f32.mrf.mxu2 }
 0x2eb   :  { %v1613_v50 = vpop.eup %1612 }
 0x2ec   :  { %269 = vrot.lane.b32.xlu2 %v1613_v50, %s1734_s27 }
 0x2ed   :  { %v1615_v52 = vpop.eup %1614 }
 0x2ee   :  { %v250_v53 = vadd.f32 1.0, %v1615_v52 }
 0x2f0   :  { %1616 = vrcp.f32 %v250_v53  ;;  %v262_v59 = vand.u32 2147483648, %v250_v53  ;;  %vm256_vm7 = vweird.f32 %v250_v53  ;;  %v260_v60 = vand.u32 2147483647, %v250_v53 }
 0x2f2   :  { %v263_v62 = vor.u32 1.1754944e-38, %v262_v59  ;;  %vm261_vm9 = vcmp.eq.f32.partialorder %v260_v60, 8.507059e+37 }
 0x2f6   :  { %v1617_v54 = vpop.eup %1616 }
 0x2f7   :  { %v252_v55 = vmul.f32 %v1617_v54, %v250_v53  ;;  %vm257_vm6 = vweird.f32 %v1617_v54 }
 0x2f8   :  { %vm258_vm8 = vmor %vm256_vm7, %vm257_vm6 }
 0x2f9   :  { %v253_v56 = vsub.f32 1.0, %v252_v55 }
 0x2fb   :  { %v254_v57 = vmul.f32 %v1617_v54, %v253_v56 }
 0x2fd   :  { %v255_v58 = vadd.f32 %v1617_v54, %v254_v57 }
 0x2ff   :  { %v259_v61 = vsel %vm258_vm8, %v1617_v54, %v255_v58 }
 0x300   :  { %v264_v0 = vsel %vm261_vm9, %v263_v62, %v259_v61 }
 0x301   :  { %v267_v3 = vmul.f32 %v264_v0, %v212_v36 }
 0x346   :  { %v270_v63 = vpop.permute.xlu2 %269 }
 0x347   :  { %v272_v2 = vmul.f32 %v270_v63, %v264_v0 }
 0x349   :  { %274 = vrot.lane.b32.xlu0 %v272_v2, %s1735_s28 }
 0x3bb   :  { %v275_v4 = vpop.permute.xlu0 %274 }
 0x3bc   :  { %v277_v6 = vadd.f32 %v275_v4, %v267_v3 }
 0x3be   :  { %1618 = vtanh.f32 %v277_v6 }
 0x3c4   :  { %v1619_v7 = vpop.eup %1618 }
 0x3c5   :  { %280 = vrot.lane.b32.xlu1 %v1619_v7, %s1734_s27 }
 0x437   :  { %v281_v12 = vpop.permute.xlu1 %280 }
 0x438   :  { %v1876_v13 = vmul.f32 %v281_v12, %v264_v0 }
 0x43a   :  { %v292_v14 = vpack.c.bf16 %v1876_v13, %v1876_v13 }
 0x43c   :  { %294 = vrot.lane.b32.xlu2 %v292_v14, %s1735_s28 }
 0x496   :  { %v295_v15 = vpop.permute.xlu2 %294 }
 0x497   :  { %1518 = vmatmul.msk.bf16.vlgmr.msrb.gmra.mxu3 %vm45_vm0, %v295_v15  ;;  %v123_v15 = vadd.f32 %v1841_v10, %v1862_v43 }
 0x51a   :  { %v308_v18 = vpop.f32.mrf.mxu3 }
 0x51b   :  { %v312_v5 = vadd.f32 %v308_v18, %v118_v1 }
 0x51d   :  { %1620 = vtanh.f32 %v312_v5  ;;  %v1519_v21 = vmul.f32 -1.442695, %v312_v5 }
 0x51f   :  { %1622 = vpow2.f32 %v1519_v21 }
 0x522   :  { %v310_v19 = vpop.f32.mrf.mxu3 }
 0x523   :  { %v1621_v20 = vpop.eup %1620 }
 0x524   :  { %335 = vrot.lane.b32.xlu0 %v1621_v20, %s1734_s27 }
 0x525   :  { %v1623_v22 = vpop.eup %1622 }
 0x526   :  { %v316_v23 = vadd.f32 1.0, %v1623_v22 }
 0x528   :  { %1624 = vrcp.f32 %v316_v23  ;;  %v328_v29 = vand.u32 2147483648, %v316_v23  ;;  %vm322_vm11 = vweird.f32 %v316_v23  ;;  %v326_v8 = vand.u32 2147483647, %v316_v23 }
 0x52a   :  { %v329_v31 = vor.u32 1.1754944e-38, %v328_v29  ;;  %vm327_vm13 = vcmp.eq.f32.partialorder %v326_v8, 8.507059e+37 }
 0x52e   :  { %v1625_v24 = vpop.eup %1624 }
 0x52f   :  { %v318_v25 = vmul.f32 %v1625_v24, %v316_v23  ;;  %vm323_vm10 = vweird.f32 %v1625_v24 }
 0x530   :  { %vm324_vm12 = vmor %vm322_vm11, %vm323_vm10 }
 0x531   :  { %v319_v26 = vsub.f32 1.0, %v318_v25 }
 0x533   :  { %v320_v27 = vmul.f32 %v1625_v24, %v319_v26 }
 0x535   :  { %v321_v28 = vadd.f32 %v1625_v24, %v320_v27 }
 0x537   :  { %v325_v30 = vsel %vm324_vm12, %v1625_v24, %v321_v28 }
 0x538   :  { %v330_v33 = vsel %vm327_vm13, %v329_v31, %v325_v30 }
 0x539   :  { %v333_v35 = vmul.f32 %v330_v33, %v277_v6 }
 0x596   :  { %v336_v32 = vpop.permute.xlu0 %335 }
 0x597   :  { %v338_v34 = vmul.f32 %v336_v32, %v330_v33 }
 0x599   :  { %340 = vrot.lane.b32.xlu1 %v338_v34, %s1735_s28 }
 0x60b   :  { %v341_v36 = vpop.permute.xlu1 %340 }
 0x60c   :  { %v343_v37 = vadd.f32 %v341_v36, %v333_v35 }
 0x60e   :  { %1626 = vtanh.f32 %v343_v37 }
 0x614   :  { %v1627_v38 = vpop.eup %1626 }
 0x615   :  { %346 = vrot.lane.b32.xlu2 %v1627_v38, %s1734_s27 }
 0x66f   :  { %v347_v39 = vpop.permute.xlu2 %346 }
 0x670   :  { %v1891_v41 = vmul.f32 %v347_v39, %v330_v33 }
 0x672   :  { %v358_v42 = vpack.c.bf16 %v1891_v41, %v1891_v41 }
 0x674   :  { %360 = vrot.lane.b32.xlu0 %v358_v42, %s1735_s28 }
 0x6e6   :  { %v361_v45 = vpop.permute.xlu0 %360 }
 0x6e7   :  { %1520 = vmatmul.msk.bf16.vlgmr.msra.gmra.mxu1 %vm45_vm0, %v361_v45  ;;  %v125_v45 = vadd.f32 %v1841_v10, %v1864_v44 }
 0x764   :  { %v374_v47 = vpop.f32.mrf.mxu1 }
 0x765   :  { %v378_v48 = vadd.f32 %v374_v47, %v120_v46 }
 0x767   :  { %1628 = vtanh.f32 %v378_v48  ;;  %v1521_v51 = vmul.f32 -1.442695, %v378_v48 }
 0x769   :  { %1630 = vpow2.f32 %v1521_v51 }
 0x76c   :  { %v376_v49 = vpop.f32.mrf.mxu1 }
 0x76d   :  { %v1629_v50 = vpop.eup %1628 }
 0x76e   :  { %401 = vrot.lane.b32.xlu1 %v1629_v50, %s1734_s27 }
 0x76f   :  { %v1631_v52 = vpop.eup %1630 }
 0x770   :  { %v382_v53 = vadd.f32 1.0, %v1631_v52 }
 0x772   :  { %1632 = vrcp.f32 %v382_v53  ;;  %v394_v59 = vand.u32 2147483648, %v382_v53  ;;  %vm388_vm15 = vweird.f32 %v382_v53  ;;  %v392_v9 = vand.u32 2147483647, %v382_v53 }
 0x774   :  { %v395_v61 = vor.u32 1.1754944e-38, %v394_v59  ;;  %vm393_vm2 = vcmp.eq.f32.partialorder %v392_v9, 8.507059e+37 }
 0x778   :  { %v1633_v54 = vpop.eup %1632 }
 0x779   :  { %v384_v55 = vmul.f32 %v1633_v54, %v382_v53  ;;  %vm389_vm14 = vweird.f32 %v1633_v54 }
 0x77a   :  { %vm390_vm1 = vmor %vm388_vm15, %vm389_vm14 }
 0x77b   :  { %v385_v56 = vsub.f32 1.0, %v384_v55 }
 0x77d   :  { %v386_v57 = vmul.f32 %v1633_v54, %v385_v56 }
 0x77f   :  { %v387_v58 = vadd.f32 %v1633_v54, %v386_v57 }
 0x781   :  { %v391_v60 = vsel %vm390_vm1, %v1633_v54, %v387_v58 }
 0x782   :  { %v396_v63 = vsel %vm393_vm2, %v395_v61, %v391_v60 }
 0x783   :  { %v399_v2 = vmul.f32 %v396_v63, %v343_v37 }
 0x7e0   :  { %v402_v62 = vpop.permute.xlu1 %401 }
 0x7e1   :  { %v404_v0 = vmul.f32 %v402_v62, %v396_v63 }
 0x7e3   :  { %406 = vrot.lane.b32.xlu2 %v404_v0, %s1735_s28  ;;  %v1585_v0 = vld [vmem:[%s2165_s4] sm:$0xff] }
 0x83d   :  { %v407_v3 = vpop.permute.xlu2 %406 }
 0x83e   :  { %v409_v4 = vadd.f32 %v407_v3, %v399_v2 }
 0x840   :  { %1634 = vtanh.f32 %v409_v4 }
 0x846   :  { %v1635_v6 = vpop.eup %1634 }
 0x847   :  { %412 = vrot.lane.b32.xlu0 %v1635_v6, %s1734_s27 }
 0x8b9   :  { %v413_v7 = vpop.permute.xlu0 %412 }
 0x8ba   :  { %v1902_v11 = vmul.f32 %v413_v7, %v396_v63  ;;  %v1586_v63 = vld [vmem:[%s2165_s4 + $0x8] sm:$0xff] }
 0x8bb   :  { %742 = vmatpush.bf16.msrb.mxu3 %v1586_v63 }
 0x8bc   :  { %v424_v12 = vpack.c.bf16 %v1902_v11, %v1902_v11 }
 0x8be   :  { %426 = vrot.lane.b32.xlu1 %v424_v12, %s1735_s28 }
 0x8bf   :  { %743 = vmatpush.bf16.msrb.mxu3 %v1585_v0 }
 0x930   :  { %v427_v14 = vpop.permute.xlu1 %426 }
 0x931   :  { %1522 = vmatmul.msk.bf16.vlgmr.msra.gmra.mxu2 %vm45_vm0, %v427_v14 }
 0x9b4   :  { %v440_v1 = vpop.f32.mrf.mxu2 }
 0x9b5   :  { %v444_v18 = vadd.f32 %v440_v1, %v123_v15 }
 0x9b7   :  { %1636 = vtanh.f32 %v444_v18  ;;  %v1523_v20 = vmul.f32 -1.442695, %v444_v18 }
 0x9b9   :  { %1638 = vpow2.f32 %v1523_v20 }
 0x9bc   :  { %v442_v5 = vpop.f32.mrf.mxu2 }
 0x9bd   :  { %v1637_v19 = vpop.eup %1636  ;;  %v1948_v5 = vld [vmem:[%s2167_s5 + $0x8] sm:$0xff] }
 0x9be   :  { %467 = vrot.lane.b32.xlu2 %v1637_v19, %s1734_s27  ;;  %804 = vmatpush.bf16.msra.mxu1 %v1948_v5  ;;  %v1954_v19 = vld [vmem:[%s2167_s5] sm:$0xff] }
 0x9bf   :  { %v1639_v21 = vpop.eup %1638  ;;  %872 = vmatpush.bf16.msra.mxu2 %v1948_v5  ;;  %936 = vmatpush.bf16.msrb.mxu0 %v1948_v5 }
 0x9c0   :  { %v448_v22 = vadd.f32 1.0, %v1639_v21  ;;  %v778_v21 = vld [vmem:[#allocation4 + $0x8] sm:$0xff] }
 0x9c2   :  { %1640 = vrcp.f32 %v448_v22  ;;  %v460_v28 = vand.u32 2147483648, %v448_v22  ;;  %vm454_vm4 = vweird.f32 %v448_v22  ;;  %v458_v43 = vand.u32 2147483647, %v448_v22  ;;  %805 = vmatpush.bf16.msra.mxu1 %v1954_v19 }
 0x9c3   :  { %873 = vmatpush.bf16.msra.mxu2 %v1954_v19  ;;  %937 = vmatpush.bf16.msrb.mxu0 %v1954_v19 }
 0x9c4   :  { %v461_v8 = vor.u32 1.1754944e-38, %v460_v28  ;;  %vm459_vm6 = vcmp.eq.f32.partialorder %v458_v43, 8.507059e+37  ;;  %v1975_v28 = vld [vmem:[%s2166_s6] ss:$0 sm:$0xff] }
 0x9c7   :  { %1128 = vmatpush.bf16.msra.mxu0 %v1948_v5 }
 0x9c8   :  { %v1641_v23 = vpop.eup %1640 }
 0x9c9   :  { %v450_v24 = vmul.f32 %v1641_v23, %v448_v22  ;;  %vm455_vm3 = vweird.f32 %v1641_v23  ;;  %v782_v22 = vpack.c.bf16 %v778_v21, %v778_v21 }
 0x9ca   :  { %vm456_vm5 = vmor %vm454_vm4, %vm455_vm3 }
 0x9cb   :  { %v451_v25 = vsub.f32 1.0, %v450_v24  ;;  %1129 = vmatpush.bf16.msra.mxu0 %v1954_v19 }
 0x9cd   :  { %v452_v26 = vmul.f32 %v1641_v23, %v451_v25 }
 0x9cf   :  { %v453_v27 = vadd.f32 %v1641_v23, %v452_v26 }
 0x9d1   :  { %v457_v29 = vsel %vm456_vm5, %v1641_v23, %v453_v27  ;;  %v128_v23 = vadd.f32 %v1841_v10, %v1882_v16 }
 0x9d2   :  { %v462_v31 = vsel %vm459_vm6, %v461_v8, %v457_v29  ;;  %v780_v8 = vld [vmem:[#allocation5 + $0x8] sm:$0xff] }
 0x9d3   :  { %v465_v33 = vmul.f32 %v462_v31, %v409_v4 }
 0xa18   :  { %v468_v30 = vpop.permute.xlu2 %467 }
 0xa19   :  { %v470_v32 = vmul.f32 %v468_v30, %v462_v31 }
 0xa1b   :  { %472 = vrot.lane.b32.xlu0 %v470_v32, %s1735_s28 }
 0xa8d   :  { %v473_v34 = vpop.permute.xlu0 %472 }
 0xa8e   :  { %v475_v35 = vadd.f32 %v473_v34, %v465_v33 }
 0xa90   :  { %1642 = vtanh.f32 %v475_v35 }
 0xa96   :  { %v1643_v36 = vpop.eup %1642 }
 0xa97   :  { %478 = vrot.lane.b32.xlu1 %v1643_v36, %s1734_s27 }
 0xb09   :  { %v479_v37 = vpop.permute.xlu1 %478 }
 0xb0a   :  { %v1913_v38 = vmul.f32 %v479_v37, %v462_v31 }
 0xb0c   :  { %v490_v39 = vpack.c.bf16 %v1913_v38, %v1913_v38 }
 0xb0e   :  { %492 = vrot.lane.b32.xlu2 %v490_v39, %s1735_s28 }
 0xb68   :  { %v493_v42 = vpop.permute.xlu2 %492 }
 0xb69   :  { %1524 = vmatmul.msk.bf16.vlgmr.msra.gmra.mxu3 %vm45_vm0, %v493_v42 }
 0xbec   :  { %v506_v46 = vpop.f32.mrf.mxu3 }
 0xbed   :  { %v510_v47 = vadd.f32 %v506_v46, %v125_v45 }
 0xbef   :  { %1644 = vtanh.f32 %v510_v47  ;;  %v1525_v50 = vmul.f32 -1.442695, %v510_v47 }
 0xbf1   :  { %1646 = vpow2.f32 %v1525_v50 }
 0xbf4   :  { %v508_v48 = vpop.f32.mrf.mxu3 }
 0xbf5   :  { %v1645_v49 = vpop.eup %1644 }
 0xbf6   :  { %533 = vrot.lane.b32.xlu0 %v1645_v49, %s1734_s27 }
 0xbf7   :  { %v1647_v51 = vpop.eup %1646 }
 0xbf8   :  { %v514_v52 = vadd.f32 1.0, %v1647_v51 }
 0xbfa   :  { %1648 = vrcp.f32 %v514_v52  ;;  %v526_v57 = vand.u32 2147483648, %v514_v52  ;;  %vm520_vm8 = vweird.f32 %v514_v52  ;;  %v524_v58 = vand.u32 2147483647, %v514_v52 }
 0xbfc   :  { %v527_v9 = vor.u32 1.1754944e-38, %v526_v57  ;;  %vm525_vm10 = vcmp.eq.f32.partialorder %v524_v58, 8.507059e+37 }
 0xbfe   :  { %220 = vrot.lane.b32.xlu0 %v1854_v40, %s1735_s28 }
 0xc00   :  { %v1649_v53 = vpop.eup %1648 }
 0xc01   :  { %v516_v54 = vmul.f32 %v1649_v53, %v514_v52  ;;  %vm521_vm7 = vweird.f32 %v1649_v53 }
 0xc02   :  { %vm522_vm9 = vmor %vm520_vm8, %vm521_vm7 }
 0xc03   :  { %v517_v55 = vsub.f32 1.0, %v516_v54 }
 0xc05   :  { %v518_v56 = vmul.f32 %v1649_v53, %v517_v55 }
 0xc07   :  { %v519_v44 = vadd.f32 %v1649_v53, %v518_v56 }
 0xc09   :  { %v523_v59 = vsel %vm522_vm9, %v1649_v53, %v519_v44 }
 0xc0a   :  { %v528_v40 = vsel %vm525_vm10, %v527_v9, %v523_v59 }
 0xc0b   :  { %v531_v2 = vmul.f32 %v528_v40, %v475_v35 }
 0xc68   :  { %v534_v60 = vpop.permute.xlu0 %533 }
 0xc69   :  { %v536_v61 = vmul.f32 %v534_v60, %v528_v40 }
 0xc6b   :  { %538 = vrot.lane.b32.xlu1 %v536_v61, %s1735_s28 }
 0xc70   :  { %v221_v62 = vpop.permute.xlu0 %220 }
 0xc71   :  { %223 = vst.msk [vmem:[#allocation3] sm:$0xff] %vm45_vm0, %v221_v62 }
 0xc73   :  { %285 = vrot.lane.b32.xlu1 %v1876_v13, %s1735_s28 }
 0xc78   :  { %v692_v13 = vld [vmem:[#allocation3] sm:$0xff] }
 0xcdd   :  { %v539_v3 = vpop.permute.xlu1 %538 }
 0xcde   :  { %v1934_v4 = vadd.f32 %v539_v3, %v531_v2 }
 0xce0   :  { %1650 = vtanh.f32 %v1934_v4 }
 0xce5   :  { %v286_v6 = vpop.permute.xlu1 %285 }
 0xce6   :  { %v1651_v7 = vpop.eup %1650  ;;  %289 = vst.msk [vmem:[#allocation3 + $0x8] sm:$0xff] %vm45_vm0, %v286_v6 }
 0xce7   :  { %544 = vrot.lane.b32.xlu2 %v1651_v7, %s1734_s27 }
 0xced   :  { %v693_v12 = vld [vmem:[#allocation3 + $0x8] sm:$0xff] }
 0xcee   :  { %v700_v14 = vpack.c.bf16 %v693_v12, %v692_v13 }
 0xcf0   :  { %1538 = vmatmul.msk.bf16.vlgmr.msrb.gmra.mxu3 %vm45_vm0, %v700_v14 }
 0xd41   :  { %v545_v15 = vpop.permute.xlu2 %544 }
 0xd42   :  { %v1940_v1 = vmul.f32 %v545_v15, %v528_v40 }
 0xd44   :  { %v556_v18 = vpack.c.bf16 %v1940_v1, %v1940_v1 }
 0xd46   :  { %558 = vrot.lane.b32.xlu2 %v556_v18, %s1735_s28 }
 0xd73   :  { %v745_v43 = vpop.f32.mrf.mxu3 }
 0xd74   :  { %v746_v29 = vadd.f32 %v1975_v28, %v745_v43 }
 0xd7b   :  { %v747_v43 = vpop.f32.mrf.mxu3 }
 0xda0   :  { %v559_v20 = vpop.permute.xlu2 %558 }
 0xda1   :  { %1526 = vmatmul.msk.bf16.vlgmr.msrb.gmra.mxu1 %vm45_vm0, %v559_v20 }
 0xda2   :  { %1000 = vmatpush.bf16.msrb.mxu1 %v1948_v5 }
 0xda6   :  { %1001 = vmatpush.bf16.msrb.mxu1 %v1954_v19 }
 0xdb1   :  { %1550 = vmatmul.msk.bf16.vlgmr.msra.gmra.mxu1 %vm45_vm0, %v782_v22 }
 0xdb2   :  { %1192 = vmatpush.bf16.msra.mxu1 %v1948_v5 }
 0xdb6   :  { %1193 = vmatpush.bf16.msra.mxu1 %v1954_v19 }
 0xe1e   :  { %v572_v24 = vpop.f32.mrf.mxu1 }
 0xe1f   :  { %v576_v25 = vadd.f32 %v572_v24, %v128_v23 }
 0xe21   :  { %1652 = vtanh.f32 %v576_v25  ;;  %v1527_v32 = vmul.f32 -1.442695, %v576_v25 }
 0xe26   :  { %v574_v26 = vpop.f32.mrf.mxu1 }
 0xe27   :  { %v1653_v27 = vpop.eup %1652 }
 0xe28   :  { %599 = vrot.lane.b32.xlu0 %v1653_v27, %s1734_s27 }
 0xe2e   :  { %v807_v30 = vpop.f32.mrf.mxu1 }
 0xe2f   :  { %v811_v31 = vadd.f32 %v807_v30, %v746_v29  ;;  %v748_v29 = vadd.f32 %v1975_v28, %v747_v43 }
 0xe30   :  { %833 = vrot.lane.b32.xlu0 %v780_v8, %s1735_s28 }
 0xe31   :  { %1654 = vtanh.f32 %v811_v31  ;;  %v1551_v35 = vmul.f32 -1.442695, %v811_v31 }
 0xe32   :  { %1656 = vpow2.f32 %v1527_v32 }
 0xe36   :  { %v809_v10 = vpop.f32.mrf.mxu1 }
 0xe37   :  { %v1655_v16 = vpop.eup %1654 }
 0xe38   :  { %838 = vrot.lane.b32.xlu1 %v1655_v16, %s1734_s27  ;;  %v1657_v33 = vpop.eup %1656 }
 0xe39   :  { %v580_v34 = vadd.f32 1.0, %v1657_v33 }
 0xe3b   :  { %1658 = vrcp.f32 %v580_v34  ;;  %v592_v49 = vand.u32 2147483648, %v580_v34  ;;  %vm586_vm12 = vweird.f32 %v580_v34  ;;  %v590_v50 = vand.u32 2147483647, %v580_v34 }
 0xe3c   :  { %1660 = vpow2.f32 %v1551_v35 }
 0xe3d   :  { %v593_v53 = vor.u32 1.1754944e-38, %v592_v49  ;;  %vm591_vm14 = vcmp.eq.f32.partialorder %v590_v50, 8.507059e+37 }
 0xe41   :  { %v1659_v36 = vpop.eup %1658 }
 0xe42   :  { %v1661_v37 = vpop.eup %1660  ;;  %v582_v39 = vmul.f32 %v1659_v36, %v580_v34  ;;  %vm587_vm11 = vweird.f32 %v1659_v36 }
 0xe43   :  { %v815_v42 = vadd.f32 1.0, %v1661_v37  ;;  %vm588_vm13 = vmor %vm586_vm12, %vm587_vm11 }
 0xe44   :  { %v583_v45 = vsub.f32 1.0, %v582_v39 }
 0xe45   :  { %1662 = vrcp.f32 %v815_v42  ;;  %v827_v59 = vand.u32 2147483648, %v815_v42  ;;  %vm821_vm1 = vweird.f32 %v815_v42  ;;  %v825_v9 = vand.u32 2147483647, %v815_v42 }
 0xe46   :  { %v584_v46 = vmul.f32 %v1659_v36, %v583_v45 }
 0xe47   :  { %v828_v40 = vor.u32 1.1754944e-38, %v827_v59  ;;  %vm826_vm3 = vcmp.eq.f32.partialorder %v825_v9, 8.507059e+37 }
 0xe48   :  { %v585_v47 = vadd.f32 %v1659_v36, %v584_v46 }
 0xe4a   :  { %v589_v51 = vsel %vm588_vm13, %v1659_v36, %v585_v47 }
 0xe4b   :  { %v1663_v48 = vpop.eup %1662  ;;  %v594_v55 = vsel %vm591_vm14, %v593_v53, %v589_v51 }
 0xe4c   :  { %v817_v52 = vmul.f32 %v1663_v48, %v815_v42  ;;  %vm822_vm15 = vweird.f32 %v1663_v48  ;;  %v597_v0 = vmul.f32 %v594_v55, %v1934_v4 }
 0xe4d   :  { %vm823_vm2 = vmor %vm821_vm1, %vm822_vm15 }
 0xe4e   :  { %v818_v44 = vsub.f32 1.0, %v817_v52 }
 0xe50   :  { %v819_v57 = vmul.f32 %v1663_v48, %v818_v44 }
 0xe52   :  { %v820_v58 = vadd.f32 %v1663_v48, %v819_v57 }
 0xe54   :  { %v824_v60 = vsel %vm823_vm2, %v1663_v48, %v820_v58 }
 0xe55   :  { %v829_v61 = vsel %vm826_vm3, %v828_v40, %v824_v60 }
 0xe9a   :  { %v600_v54 = vpop.permute.xlu0 %599 }
 0xe9b   :  { %v602_v56 = vmul.f32 %v600_v54, %v594_v55 }
 0xe9d   :  { %604 = vrot.lane.b32.xlu2 %v602_v56, %s1735_s28 }
 0xea2   :  { %v834_v7 = vpop.permute.xlu0 %833 }
 0xea3   :  { %v836_v13 = vmul.f32 %v834_v7, %v829_v61 }
 0xeaa   :  { %v839_v62 = vpop.permute.xlu1 %838 }
 0xeab   :  { %v841_v63 = vmul.f32 %v839_v62, %v829_v61 }
 0xead   :  { %843 = vrot.lane.b32.xlu1 %v841_v63, %s1735_s28 }
 0xef7   :  { %v605_v2 = vpop.permute.xlu2 %604 }
 0xef8   :  { %v1983_v3 = vadd.f32 %v605_v2, %v597_v0 }
 0xefa   :  { %1664 = vtanh.f32 %v1983_v3 }
 0xf00   :  { %v1665_v6 = vpop.eup %1664 }
 0xf01   :  { %610 = vrot.lane.b32.xlu2 %v1665_v6, %s1734_s27 }
 0xf1f   :  { %v844_v12 = vpop.permute.xlu1 %843 }
 0xf20   :  { %v846_v14 = vadd.f32 %v844_v12, %v836_v13 }
 0xf22   :  { %1666 = vtanh.f32 %v846_v14 }
 0xf28   :  { %v1667_v15 = vpop.eup %1666 }
 0xf29   :  { %849 = vrot.lane.b32.xlu0 %v1667_v15, %s1734_s27 }
 0xf5b   :  { %v611_v18 = vpop.permute.xlu2 %610 }
 0xf5c   :  { %v1988_v20 = vmul.f32 %v611_v18, %v594_v55 }
 0xf5e   :  { %v622_v4 = vpack.c.bf16 %v1988_v20, %v1988_v20 }
 0xf60   :  { %624 = vrot.lane.b32.xlu1 %v622_v4, %s1735_s28 }
 0xf9b   :  { %v850_v21 = vpop.permute.xlu0 %849 }
 0xf9c   :  { %v1993_v22 = vmul.f32 %v850_v21, %v829_v61 }
 0xf9e   :  { %v859_v23 = vpack.c.bf16 %v1993_v22, %v1993_v22 }
 0xfa0   :  { %861 = vrot.lane.b32.xlu2 %v859_v23, %s1735_s28 }
 0xfd2   :  { %v625_v24 = vpop.permute.xlu1 %624 }
 0xfd3   :  { %1528 = vmatmul.msk.bf16.vlgmr.msrb.gmra.mxu2 %vm45_vm0, %v625_v24 }
 0xfd4   :  { %1064 = vmatpush.bf16.msrb.mxu2 %v1948_v5 }
 0xfd8   :  { %1065 = vmatpush.bf16.msrb.mxu2 %v1954_v19 }
 0xffa   :  { %v862_v25 = vpop.permute.xlu2 %861 }
 0xffb   :  { %1552 = vmatmul.msk.bf16.vlgmr.msra.gmra.mxu2 %vm45_vm0, %v862_v25 }
 0xffc   :  { %1256 = vmatpush.bf16.msra.mxu2 %v1948_v5 }
0x1000   :  { %1257 = vmatpush.bf16.msra.mxu2 %v1954_v19 }
0x1056   :  { %v2004_v26 = vpop.f32.mrf.mxu2 }
0x105e   :  { %v640_v27 = vpop.f32.mrf.mxu2 }
0x107e   :  { %v875_v8 = vpop.f32.mrf.mxu2 }
0x107f   :  { %v879_v30 = vadd.f32 %v875_v8, %v748_v29 }
0x1081   :  { %1668 = vtanh.f32 %v879_v30  ;;  %v1553_v16 = vmul.f32 -1.442695, %v879_v30 }
0x1083   :  { %1670 = vpow2.f32 %v1553_v16 }
0x1086   :  { %v877_v31 = vpop.f32.mrf.mxu2 }
0x1087   :  { %v1669_v10 = vpop.eup %1668 }
0x1088   :  { %902 = vrot.lane.b32.xlu0 %v1669_v10, %s1734_s27 }
0x1089   :  { %v1671_v5 = vpop.eup %1670 }
0x108a   :  { %v883_v19 = vadd.f32 1.0, %v1671_v5 }
0x108c   :  { %1672 = vrcp.f32 %v883_v19  ;;  %v895_v37 = vand.u32 2147483648, %v883_v19  ;;  %vm889_vm5 = vweird.f32 %v883_v19  ;;  %v893_v39 = vand.u32 2147483647, %v883_v19 }
0x108e   :  { %v896_v45 = vor.u32 1.1754944e-38, %v895_v37  ;;  %vm894_vm7 = vcmp.eq.f32.partialorder %v893_v39, 8.507059e+37 }
0x1090   :  { %351 = vrot.lane.b32.xlu0 %v1891_v41, %s1735_s28 }
0x1092   :  { %v1673_v32 = vpop.eup %1672 }
0x1093   :  { %v885_v33 = vmul.f32 %v1673_v32, %v883_v19  ;;  %vm890_vm4 = vweird.f32 %v1673_v32 }
0x1094   :  { %vm891_vm6 = vmor %vm889_vm5, %vm890_vm4 }
0x1095   :  { %v886_v34 = vsub.f32 1.0, %v885_v33 }
0x1097   :  { %v887_v35 = vmul.f32 %v1673_v32, %v886_v34 }
0x1099   :  { %v888_v36 = vadd.f32 %v1673_v32, %v887_v35 }
0x109b   :  { %v892_v42 = vsel %vm891_vm6, %v1673_v32, %v888_v36 }
0x109c   :  { %v897_v41 = vsel %vm894_vm7, %v896_v45, %v892_v42 }
0x109d   :  { %v900_v49 = vmul.f32 %v897_v41, %v846_v14 }
0x10fa   :  { %v903_v46 = vpop.permute.xlu0 %902 }
0x10fb   :  { %v905_v47 = vmul.f32 %v903_v46, %v897_v41 }
0x10fd   :  { %907 = vrot.lane.b32.xlu1 %v905_v47, %s1735_s28 }
0x1102   :  { %v352_v48 = vpop.permute.xlu0 %351 }
0x1103   :  { %355 = vst.msk [vmem:[#allocation3 + $0x10] sm:$0xff] %vm45_vm0, %v352_v48 }
0x1105   :  { %417 = vrot.lane.b32.xlu1 %v1902_v11, %s1735_s28 }
0x110a   :  { %v694_v54 = vld [vmem:[#allocation3 + $0x10] sm:$0xff] }
0x116f   :  { %v908_v50 = vpop.permute.xlu1 %907 }
0x1170   :  { %v910_v51 = vadd.f32 %v908_v50, %v900_v49 }
0x1172   :  { %1674 = vtanh.f32 %v910_v51 }
0x1177   :  { %v418_v52 = vpop.permute.xlu1 %417 }
0x1178   :  { %v1675_v53 = vpop.eup %1674  ;;  %421 = vst.msk [vmem:[#allocation3 + $0x18] sm:$0xff] %vm45_vm0, %v418_v52 }
0x1179   :  { %913 = vrot.lane.b32.xlu2 %v1675_v53, %s1734_s27 }
0x117f   :  { %v695_v55 = vld [vmem:[#allocation3 + $0x18] sm:$0xff] }
0x1180   :  { %v701_v56 = vpack.c.bf16 %v695_v55, %v694_v54 }
0x1182   :  { %1539 = vmatmul.msk.bf16.gmra.mxu3 %vm45_vm0, %v701_v56 }
0x11d3   :  { %v914_v44 = vpop.permute.xlu2 %913 }
0x11d4   :  { %v2017_v57 = vmul.f32 %v914_v44, %v897_v41 }
0x11d6   :  { %v923_v11 = vpack.c.bf16 %v2017_v57, %v2017_v57 }
0x11d8   :  { %925 = vrot.lane.b32.xlu2 %v923_v11, %s1735_s28 }
0x1205   :  { %v750_v59 = vpop.f32.mrf.mxu3 }
0x1206   :  { %v751_v9 = vadd.f32 %v1975_v28, %v750_v59 }
0x120d   :  { %v752_v5 = vpop.f32.mrf.mxu3 }
0x120e   :  { %v753_v19 = vadd.f32 %v1975_v28, %v752_v5 }
0x1232   :  { %v926_v58 = vpop.permute.xlu2 %925 }
0x1233   :  { %1554 = vmatmul.msk.bf16.vlgmr.msrb.gmra.mxu0 %vm45_vm0, %v926_v58 }
0x12b0   :  { %v939_v60 = vpop.f32.mrf.mxu0 }
0x12b1   :  { %v943_v40 = vadd.f32 %v939_v60, %v751_v9 }
0x12b3   :  { %1676 = vtanh.f32 %v943_v40  ;;  %v1555_v63 = vmul.f32 -1.442695, %v943_v40 }
0x12b5   :  { %1678 = vpow2.f32 %v1555_v63 }
0x12b8   :  { %v941_v61 = vpop.f32.mrf.mxu0 }
0x12b9   :  { %v1677_v62 = vpop.eup %1676 }
0x12ba   :  { %966 = vrot.lane.b32.xlu0 %v1677_v62, %s1734_s27 }
0x12bb   :  { %v1679_v0 = vpop.eup %1678 }
0x12bc   :  { %v947_v2 = vadd.f32 1.0, %v1679_v0 }
0x12be   :  { %1680 = vrcp.f32 %v947_v2  ;;  %v959_v15 = vand.u32 2147483648, %v947_v2  ;;  %vm953_vm9 = vweird.f32 %v947_v2  ;;  %v957_v18 = vand.u32 2147483647, %v947_v2 }
0x12c0   :  { %v960_v21 = vor.u32 1.1754944e-38, %v959_v15  ;;  %vm958_vm11 = vcmp.eq.f32.partialorder %v957_v18, 8.507059e+37 }
0x12c4   :  { %v1681_v6 = vpop.eup %1680 }
0x12c5   :  { %v949_v7 = vmul.f32 %v1681_v6, %v947_v2  ;;  %vm954_vm8 = vweird.f32 %v1681_v6 }
0x12c6   :  { %vm955_vm10 = vmor %vm953_vm9, %vm954_vm8 }
0x12c7   :  { %v950_v13 = vsub.f32 1.0, %v949_v7 }
0x12c9   :  { %v951_v12 = vmul.f32 %v1681_v6, %v950_v13 }
0x12cb   :  { %v952_v14 = vadd.f32 %v1681_v6, %v951_v12 }
0x12cd   :  { %v956_v4 = vsel %vm955_vm10, %v1681_v6, %v952_v14 }
0x12ce   :  { %v961_v24 = vsel %vm958_vm11, %v960_v21, %v956_v4 }
0x12cf   :  { %v964_v27 = vmul.f32 %v961_v24, %v910_v51 }
0x132c   :  { %v967_v23 = vpop.permute.xlu0 %966 }
0x132d   :  { %v969_v25 = vmul.f32 %v967_v23, %v961_v24 }
0x132f   :  { %971 = vrot.lane.b32.xlu1 %v969_v25, %s1735_s28 }
0x13a1   :  { %v972_v43 = vpop.permute.xlu1 %971 }
0x13a2   :  { %v974_v29 = vadd.f32 %v972_v43, %v964_v27 }
0x13a4   :  { %1682 = vtanh.f32 %v974_v29 }
0x13aa   :  { %v1683_v8 = vpop.eup %1682 }
0x13ab   :  { %977 = vrot.lane.b32.xlu2 %v1683_v8, %s1734_s27 }
0x1405   :  { %v978_v30 = vpop.permute.xlu2 %977 }
0x1406   :  { %v2027_v31 = vmul.f32 %v978_v30, %v961_v24 }
0x1408   :  { %v987_v10 = vpack.c.bf16 %v2027_v31, %v2027_v31 }
0x140a   :  { %989 = vrot.lane.b32.xlu0 %v987_v10, %s1735_s28 }
0x147c   :  { %v990_v16 = vpop.permute.xlu0 %989 }
0x147d   :  { %1556 = vmatmul.msk.bf16.vlgmr.msrb.gmra.mxu1 %vm45_vm0, %v990_v16 }
0x14fa   :  { %v1003_v32 = vpop.f32.mrf.mxu1 }
0x14fb   :  { %v1007_v33 = vadd.f32 %v1003_v32, %v753_v19 }
0x14fd   :  { %1684 = vtanh.f32 %v1007_v33  ;;  %v1557_v36 = vmul.f32 -1.442695, %v1007_v33 }
0x14ff   :  { %1686 = vpow2.f32 %v1557_v36 }
0x1502   :  { %v1005_v34 = vpop.f32.mrf.mxu1 }
0x1503   :  { %v1685_v35 = vpop.eup %1684 }
0x1504   :  { %1030 = vrot.lane.b32.xlu1 %v1685_v35, %s1734_s27 }
0x1505   :  { %v1687_v37 = vpop.eup %1686 }
0x1506   :  { %v1011_v39 = vadd.f32 1.0, %v1687_v37 }
0x1508   :  { %1688 = vrcp.f32 %v1011_v39  ;;  %v1023_v48 = vand.u32 2147483648, %v1011_v39  ;;  %vm1017_vm13 = vweird.f32 %v1011_v39  ;;  %v1021_v49 = vand.u32 2147483647, %v1011_v39 }
0x150a   :  { %v1024_v51 = vor.u32 1.1754944e-38, %v1023_v48  ;;  %vm1022_vm15 = vcmp.eq.f32.partialorder %v1021_v49, 8.507059e+37 }
0x150c   :  { %483 = vrot.lane.b32.xlu1 %v1913_v38, %s1735_s28 }
0x150e   :  { %v1689_v42 = vpop.eup %1688 }
0x150f   :  { %v1013_v45 = vmul.f32 %v1689_v42, %v1011_v39  ;;  %vm1018_vm12 = vweird.f32 %v1689_v42 }
0x1510   :  { %vm1019_vm14 = vmor %vm1017_vm13, %vm1018_vm12 }
0x1511   :  { %v1014_v46 = vsub.f32 1.0, %v1013_v45 }
0x1513   :  { %v1015_v41 = vmul.f32 %v1689_v42, %v1014_v46 }
0x1515   :  { %v1016_v47 = vadd.f32 %v1689_v42, %v1015_v41 }
0x1517   :  { %v1020_v50 = vsel %vm1019_vm14, %v1689_v42, %v1016_v47 }
0x1518   :  { %v1025_v38 = vsel %vm1022_vm15, %v1024_v51, %v1020_v50 }
0x1519   :  { %v1028_v55 = vmul.f32 %v1025_v38, %v974_v29  ;;  %v1732_v29 = vld [vmem:[%s2164_s3] ss:$0 sm:$0xff]  ;;  %s1736_s3 = smov 96  }
0x151a   :  { %v130_v8 = vadd.f32 %v1732_v29, %v1884_v17 }
0x151c   :  { %v642_v10 = vadd.f32 %v2004_v26, %v130_v8 }
0x151e   :  { %v1529_v36 = vmul.f32 -1.442695, %v642_v10 }
0x1576   :  { %v1031_v52 = vpop.permute.xlu1 %1030 }
0x1577   :  { %v1033_v53 = vmul.f32 %v1031_v52, %v1025_v38 }
0x1579   :  { %1035 = vrot.lane.b32.xlu2 %v1033_v53, %s1735_s28 }
0x157e   :  { %v484_v54 = vpop.permute.xlu1 %483 }
0x157f   :  { %487 = vst.msk [vmem:[#allocation3 + $0x20] sm:$0xff] %vm45_vm0, %v484_v54 }
0x1581   :  { %549 = vrot.lane.b32.xlu2 %v1940_v1, %s1735_s28 }
0x1586   :  { %v696_v59 = vld [vmem:[#allocation3 + $0x20] sm:$0xff] }
0x15d3   :  { %v1036_v56 = vpop.permute.xlu2 %1035 }
0x15d4   :  { %v1038_v44 = vadd.f32 %v1036_v56, %v1028_v55 }
0x15d6   :  { %1690 = vtanh.f32 %v1038_v44 }
0x15db   :  { %v550_v11 = vpop.permute.xlu2 %549 }
0x15dc   :  { %v1691_v58 = vpop.eup %1690  ;;  %553 = vst.msk [vmem:[#allocation3 + $0x28] sm:$0xff] %vm45_vm0, %v550_v11 }
0x15dd   :  { %1041 = vrot.lane.b32.xlu0 %v1691_v58, %s1734_s27 }
0x15e3   :  { %v697_v9 = vld [vmem:[#allocation3 + $0x28] sm:$0xff] }
0x15e4   :  { %v702_v60 = vpack.c.bf16 %v697_v9, %v696_v59 }
0x15e6   :  { %1540 = vmatmul.msk.bf16.gmra.mxu3 %vm45_vm0, %v702_v60 }
0x164f   :  { %v1042_v40 = vpop.permute.xlu0 %1041 }
0x1650   :  { %v2044_v61 = vmul.f32 %v1042_v40, %v1025_v38 }
0x1652   :  { %v1051_v1 = vpack.c.bf16 %v2044_v61, %v2044_v61 }
0x1654   :  { %1053 = vrot.lane.b32.xlu0 %v1051_v1, %s1735_s28 }
0x1669   :  { %v755_v63 = vpop.f32.mrf.mxu3 }
0x166a   :  { %v756_v0 = vadd.f32 %v1975_v28, %v755_v63 }
0x16c6   :  { %v1054_v62 = vpop.permute.xlu0 %1053 }
0x16c7   :  { %1558 = vmatmul.msk.bf16.vlgmr.msrb.gmra.mxu2 %vm45_vm0, %v1054_v62 }
0x174a   :  { %v1067_v2 = vpop.f32.mrf.mxu2 }
0x174b   :  { %v1071_v6 = vadd.f32 %v1067_v2, %v756_v0 }
0x174d   :  { %1692 = vtanh.f32 %v1071_v6  ;;  %v1559_v12 = vmul.f32 -1.442695, %v1071_v6 }
0x174f   :  { %1694 = vpow2.f32 %v1559_v12 }
0x1752   :  { %v1069_v7 = vpop.f32.mrf.mxu2 }
0x1753   :  { %v1693_v13 = vpop.eup %1692 }
0x1754   :  { %1094 = vrot.lane.b32.xlu1 %v1693_v13, %s1734_s27 }
0x1755   :  { %v1695_v14 = vpop.eup %1694 }
0x1756   :  { %v1075_v15 = vadd.f32 1.0, %v1695_v14 }
0x1758   :  { %1696 = vrcp.f32 %v1075_v15  ;;  %v1087_v25 = vand.u32 2147483648, %v1075_v15  ;;  %vm1081_vm2 = vweird.f32 %v1075_v15  ;;  %v1085_v27 = vand.u32 2147483647, %v1075_v15 }
0x1759   :  { %1698 = vtanh.f32 %v642_v10 }
0x175a   :  { %v1088_v30 = vor.u32 1.1754944e-38, %v1087_v25  ;;  %vm1086_vm4 = vcmp.eq.f32.partialorder %v1085_v27, 8.507059e+37 }
0x175e   :  { %v1697_v18 = vpop.eup %1696 }
0x175f   :  { %v1077_v4 = vmul.f32 %v1697_v18, %v1075_v15  ;;  %vm1082_vm1 = vweird.f32 %v1697_v18  ;;  %v1699_v32 = vpop.eup %1698 }
0x1760   :  { %vm1083_vm3 = vmor %vm1081_vm2, %vm1082_vm1 }
0x1761   :  { %v1078_v21 = vsub.f32 1.0, %v1077_v4 }
0x1763   :  { %v1079_v23 = vmul.f32 %v1697_v18, %v1078_v21 }
0x1765   :  { %v1080_v24 = vadd.f32 %v1697_v18, %v1079_v23 }
0x1767   :  { %v1084_v43 = vsel %vm1083_vm3, %v1697_v18, %v1080_v24 }
0x1768   :  { %v1089_v5 = vsel %vm1086_vm4, %v1088_v30, %v1084_v43 }
0x1769   :  { %v1092_v33 = vmul.f32 %v1089_v5, %v1038_v44  ;;  %v757_v44 = vpop.f32.mrf.mxu3 }
0x176a   :  { %v758_v11 = vadd.f32 %v1975_v28, %v757_v44 }
0x17c6   :  { %v1095_v16 = vpop.permute.xlu1 %1094 }
0x17c7   :  { %v1097_v19 = vmul.f32 %v1095_v16, %v1089_v5 }
0x17c9   :  { %1099 = vrot.lane.b32.xlu2 %v1097_v19, %s1735_s28 }
0x17d1   :  { %665 = vrot.lane.b32.xlu2 %v1699_v32, %s1734_s27 }
0x1823   :  { %v1100_v34 = vpop.permute.xlu2 %1099 }
0x1824   :  { %v2059_v35 = vadd.f32 %v1100_v34, %v1092_v33 }
0x1826   :  { %1700 = vtanh.f32 %v2059_v35 }
0x1827   :  { %1702 = vpow2.f32 %v1529_v36 }
0x182b   :  { %v666_v53 = vpop.permute.xlu2 %665 }
0x182c   :  { %v1701_v17 = vpop.eup %1700 }
0x182d   :  { %1105 = vrot.lane.b32.xlu0 %v1701_v17, %s1734_s27  ;;  %v1703_v26 = vpop.eup %1702 }
0x182e   :  { %v646_v37 = vadd.f32 1.0, %v1703_v26 }
0x1830   :  { %1704 = vrcp.f32 %v646_v37  ;;  %v658_v50 = vand.u32 2147483648, %v646_v37  ;;  %vm652_vm6 = vweird.f32 %v646_v37  ;;  %v656_v51 = vand.u32 2147483647, %v646_v37 }
0x1832   :  { %v659_v38 = vor.u32 1.1754944e-38, %v658_v50  ;;  %vm657_vm8 = vcmp.eq.f32.partialorder %v656_v51, 8.507059e+37 }
0x1836   :  { %v1705_v39 = vpop.eup %1704 }
0x1837   :  { %v648_v42 = vmul.f32 %v1705_v39, %v646_v37  ;;  %vm653_vm5 = vweird.f32 %v1705_v39 }
0x1838   :  { %vm654_vm7 = vmor %vm652_vm6, %vm653_vm5  ;;  %vm1476_vm6 = vcmask 516096  }
0x1839   :  { %v649_v45 = vsub.f32 1.0, %v648_v42 }
0x183b   :  { %v650_v46 = vmul.f32 %v1705_v39, %v649_v45 }
0x183d   :  { %v651_v48 = vadd.f32 %v1705_v39, %v650_v46 }
0x183f   :  { %v655_v52 = vsel %vm654_vm7, %v1705_v39, %v651_v48 }
0x1840   :  { %v660_v54 = vsel %vm657_vm8, %v659_v38, %v655_v52 }
0x1841   :  { %v668_v55 = vmul.f32 %v666_v53, %v660_v54  ;;  %v663_v60 = vmul.f32 %v660_v54, %v1983_v3 }
0x189f   :  { %v1106_v41 = vpop.permute.xlu0 %1105 }
0x18a0   :  { %v2063_v47 = vmul.f32 %v1106_v41, %v1089_v5 }
0x18a2   :  { %v1115_v49 = vpack.c.bf16 %v2063_v47, %v2063_v47 }
0x18a4   :  { %1117 = vrot.lane.b32.xlu1 %v1115_v49, %s1735_s28 }
0x18ac   :  { %670 = vrot.lane.b32.xlu1 %v668_v55, %s1735_s28 }
0x1916   :  { %v1118_v56 = vpop.permute.xlu1 %1117 }
0x1917   :  { %1560 = vmatmul.msk.bf16.vlgmr.msra.gmra.mxu0 %vm45_vm0, %v1118_v56 }
0x191e   :  { %v671_v9 = vpop.permute.xlu1 %670 }
0x191f   :  { %v2072_v40 = vadd.f32 %v671_v9, %v663_v60 }
0x1994   :  { %v1131_v58 = vpop.f32.mrf.mxu0 }
0x1995   :  { %v1135_v59 = vadd.f32 %v1131_v58, %v758_v11 }
0x1997   :  { %1706 = vtanh.f32 %v1135_v59  ;;  %v1561_v0 = vmul.f32 -1.442695, %v1135_v59 }
0x1998   :  { %1708 = vtanh.f32 %v2072_v40 }
0x1999   :  { %1710 = vpow2.f32 %v1561_v0 }
0x199c   :  { %v1133_v1 = vpop.f32.mrf.mxu0 }
0x199d   :  { %v1707_v62 = vpop.eup %1706 }
0x199e   :  { %1158 = vrot.lane.b32.xlu0 %v1707_v62, %s1734_s27  ;;  %v1709_v63 = vpop.eup %1708 }
0x199f   :  { %v1711_v2 = vpop.eup %1710 }
0x19a0   :  { %v1139_v6 = vadd.f32 1.0, %v1711_v2 }
0x19a2   :  { %1712 = vrcp.f32 %v1139_v6  ;;  %v1151_v15 = vand.u32 2147483648, %v1139_v6  ;;  %vm1145_vm10 = vweird.f32 %v1139_v6  ;;  %v1149_v18 = vand.u32 2147483647, %v1139_v6 }
0x19a4   :  { %v1152_v21 = vor.u32 1.1754944e-38, %v1151_v15  ;;  %vm1150_vm12 = vcmp.eq.f32.partialorder %v1149_v18, 8.507059e+37 }
0x19a6   :  { %676 = vrot.lane.b32.xlu0 %v1709_v63, %s1734_s27 }
0x19a8   :  { %v1713_v7 = vpop.eup %1712 }
0x19a9   :  { %v1141_v13 = vmul.f32 %v1713_v7, %v1139_v6  ;;  %vm1146_vm9 = vweird.f32 %v1713_v7 }
0x19aa   :  { %vm1147_vm11 = vmor %vm1145_vm10, %vm1146_vm9 }
0x19ab   :  { %v1142_v12 = vsub.f32 1.0, %v1141_v13 }
0x19ad   :  { %v1143_v3 = vmul.f32 %v1713_v7, %v1142_v12 }
0x19af   :  { %v1144_v14 = vadd.f32 %v1713_v7, %v1143_v3 }
0x19b1   :  { %v1148_v4 = vsel %vm1147_vm11, %v1713_v7, %v1144_v14 }
0x19b2   :  { %v1153_v24 = vsel %vm1150_vm12, %v1152_v21, %v1148_v4 }
0x19b3   :  { %v1156_v29 = vmul.f32 %v1153_v24, %v2059_v35 }
0x1a10   :  { %v1159_v23 = vpop.permute.xlu0 %1158 }
0x1a11   :  { %v1161_v25 = vmul.f32 %v1159_v23, %v1153_v24 }
0x1a13   :  { %1163 = vrot.lane.b32.xlu2 %v1161_v25, %s1735_s28 }
0x1a18   :  { %v677_v27 = vpop.permute.xlu0 %676 }
0x1a19   :  { %v679_v43 = vmul.f32 %v677_v27, %v660_v54 }
0x1a1b   :  { %615 = vrot.lane.b32.xlu2 %v1988_v20, %s1735_s28  ;;  %681 = vrot.lane.b32.xlu0 %v679_v43, %s1735_s28 }
0x1a6d   :  { %v1164_v8 = vpop.permute.xlu2 %1163 }
0x1a6e   :  { %v1166_v30 = vadd.f32 %v1164_v8, %v1156_v29 }
0x1a70   :  { %1714 = vtanh.f32 %v1166_v30 }
0x1a75   :  { %v616_v10 = vpop.permute.xlu2 %615 }
0x1a76   :  { %v1715_v16 = vpop.eup %1714  ;;  %619 = vst.msk [vmem:[#allocation3 + $0x30] sm:$0xff] %vm45_vm0, %v616_v10 }
0x1a77   :  { %1169 = vrot.lane.b32.xlu1 %v1715_v16, %s1734_s27 }
0x1a7d   :  { %v698_v19 = vld [vmem:[#allocation3 + $0x30] sm:$0xff] }
0x1a8d   :  { %v682_v5 = vpop.permute.xlu0 %681 }
0x1a8e   :  { %685 = vst.msk [vmem:[#allocation3 + $0x38] sm:$0xff] %vm45_vm0, %v682_v5 }
0x1a8f   :  { %686 = vst.msk [vmem:[#allocation4] sm:$0xff] %vm45_vm0, %v682_v5 }
0x1a95   :  { %v699_v20 = vld [vmem:[#allocation3 + $0x38] sm:$0xff] }
0x1a96   :  { %v703_v32 = vpack.c.bf16 %v699_v20, %v698_v19 }
0x1a98   :  { %1541 = vmatmul.msk.bf16.gmra.mxu3 %vm45_vm0, %v703_v32 }
0x1ae9   :  { %v1170_v33 = vpop.permute.xlu1 %1169 }
0x1aea   :  { %v1172_v34 = vmul.f32 %v1170_v33, %v1153_v24 }
0x1aec   :  { %v1179_v35 = vpack.c.bf16 %v1172_v34, %v1172_v34 }
0x1aee   :  { %1181 = vrot.lane.b32.xlu1 %v1179_v35, %s1735_s28 }
0x1b1b   :  { %v760_v36 = vpop.f32.mrf.mxu3 }
0x1b1c   :  { %v761_v26 = vadd.f32 %v1975_v28, %v760_v36 }
0x1b60   :  { %v1182_v17 = vpop.permute.xlu1 %1181 }
0x1b61   :  { %1562 = vmatmul.msk.bf16.vlgmr.msra.gmra.mxu1 %vm45_vm0, %v1182_v17 }
0x1bde   :  { %v1195_v37 = vpop.f32.mrf.mxu1 }
0x1bdf   :  { %v1199_v39 = vadd.f32 %v1195_v37, %v761_v26 }
0x1be1   :  { %1716 = vtanh.f32 %v1199_v39  ;;  %v1563_v46 = vmul.f32 -1.442695, %v1199_v39 }
0x1be3   :  { %1718 = vpow2.f32 %v1563_v46 }
0x1be6   :  { %v1197_v42 = vpop.f32.mrf.mxu1 }
0x1be7   :  { %v1717_v45 = vpop.eup %1716 }
0x1be8   :  { %1222 = vrot.lane.b32.xlu2 %v1717_v45, %s1734_s27 }
0x1be9   :  { %v1719_v41 = vpop.eup %1718 }
0x1bea   :  { %v1203_v48 = vadd.f32 1.0, %v1719_v41 }
0x1bec   :  { %1720 = vrcp.f32 %v1203_v48  ;;  %v1215_v53 = vand.u32 2147483648, %v1203_v48  ;;  %vm1209_vm14 = vweird.f32 %v1203_v48  ;;  %v1213_v54 = vand.u32 2147483647, %v1203_v48 }
0x1bee   :  { %v1216_v56 = vor.u32 1.1754944e-38, %v1215_v53  ;;  %vm1214_vm1 = vcmp.eq.f32.partialorder %v1213_v54, 8.507059e+37 }
0x1bf2   :  { %v1721_v49 = vpop.eup %1720 }
0x1bf3   :  { %v1205_v50 = vmul.f32 %v1721_v49, %v1203_v48  ;;  %vm1210_vm13 = vweird.f32 %v1721_v49 }
0x1bf4   :  { %vm1211_vm15 = vmor %vm1209_vm14, %vm1210_vm13 }
0x1bf5   :  { %v1206_v51 = vsub.f32 1.0, %v1205_v50 }
0x1bf7   :  { %v1207_v52 = vmul.f32 %v1721_v49, %v1206_v51 }
0x1bf9   :  { %v1208_v38 = vadd.f32 %v1721_v49, %v1207_v52 }
0x1bfb   :  { %v1212_v55 = vsel %vm1211_vm15, %v1721_v49, %v1208_v38 }
0x1bfc   :  { %v1217_v11 = vsel %vm1214_vm1, %v1216_v56, %v1212_v55 }
0x1bfd   :  { %v1220_v59 = vmul.f32 %v1217_v11, %v1166_v30 }
0x1c42   :  { %v1223_v44 = vpop.permute.xlu2 %1222 }
0x1c43   :  { %v1225_v58 = vmul.f32 %v1223_v44, %v1217_v11 }
0x1c45   :  { %1227 = vrot.lane.b32.xlu0 %v1225_v58, %s1735_s28 }
0x1cb7   :  { %v1228_v9 = vpop.permute.xlu0 %1227 }
0x1cb8   :  { %v2092_v60 = vadd.f32 %v1228_v9, %v1220_v59 }
0x1cba   :  { %1722 = vtanh.f32 %v2092_v60 }
0x1cc0   :  { %v1723_v1 = vpop.eup %1722 }
0x1cc1   :  { %1233 = vrot.lane.b32.xlu1 %v1723_v1, %s1734_s27 }
0x1d33   :  { %v1234_v62 = vpop.permute.xlu1 %1233 }
0x1d34   :  { %v1236_v63 = vmul.f32 %v1234_v62, %v1217_v11 }
0x1d36   :  { %v1243_v0 = vpack.c.bf16 %v1236_v63, %v1236_v63 }
0x1d38   :  { %1245 = vrot.lane.b32.xlu2 %v1243_v0, %s1735_s28 }
0x1d40   :  { %854 = vrot.lane.b32.xlu2 %v1993_v22, %s1735_s28 }
0x1d48   :  { %982 = vrot.lane.b32.xlu2 %v2027_v31, %s1735_s28  ;;  %v762_v31 = vpop.f32.mrf.mxu3 }
0x1d49   :  { %v763_v12 = vadd.f32 %v1975_v28, %v762_v31  ;;  %v1590_v28 = vld [vmem:[%s2168_s7 + $0x8] sm:$0xff] }
0x1d4a   :  { %1362 = vmatpush.bf16.msrb.mxu0 %v1590_v28 }
0x1d50   :  { %1174 = vrot.lane.b32.xlu2 %v1172_v34, %s1735_s28 }
0x1d58   :  { %688 = vrot.lane.b32.xlu2 %v2072_v40, %s1736_s3 }
0x1d92   :  { %v1246_v2 = vpop.permute.xlu2 %1245 }
0x1d93   :  { %1564 = vmatmul.msk.bf16.vlgmr.msra.gmra.mxu2 %vm45_vm0, %v1246_v2 }
0x1d9a   :  { %v855_v6 = vpop.permute.xlu2 %854 }
0x1d9b   :  { %857 = vst.msk [vmem:[#allocation3] sm:$0xff] %vm45_vm0, %v855_v6 }
0x1da2   :  { %v983_v7 = vpop.permute.xlu2 %982  ;;  %v1312_v32 = vld [vmem:[#allocation3] sm:$0xff] }
0x1da3   :  { %985 = vst.msk [vmem:[#allocation3 + $0x10] sm:$0xff] %vm45_vm0, %v983_v7 }
0x1daa   :  { %v1175_v13 = vpop.permute.xlu2 %1174  ;;  %v1314_v36 = vld [vmem:[#allocation3 + $0x10] sm:$0xff] }
0x1dab   :  { %1177 = vst.msk [vmem:[#allocation3 + $0x28] sm:$0xff] %vm45_vm0, %v1175_v13 }
0x1db2   :  { %v689_v22 = vpop.permute.xlu2 %688  ;;  %v1317_v51 = vld [vmem:[#allocation3 + $0x28] sm:$0xff] }
0x1db3   :  { %691 = vst.msk [vmem:[#allocation5] sm:$0xff] %vm45_vm0, %v689_v22 }
0x1e16   :  { %v1259_v3 = vpop.f32.mrf.mxu2 }
0x1e17   :  { %v1263_v40 = vadd.f32 %v1259_v3, %v763_v12  ;;  %v1426_v3 = vld [vmem:[%s2170_s9 + $0x8] sm:$0xff] }
0x1e19   :  { %1724 = vtanh.f32 %v1263_v40  ;;  %v1565_v18 = vmul.f32 -1.442695, %v1263_v40  ;;  %v1425_v40 = vld [vmem:[%s2170_s9] sm:$0xff] }
0x1e1b   :  { %1726 = vpow2.f32 %v1565_v18  ;;  %v1427_v18 = vld [vmem:[%s2170_s9 + $0x10] sm:$0xff] }
0x1e1e   :  { %v1261_v14 = vpop.f32.mrf.mxu2 }
0x1e1f   :  { %v1725_v15 = vpop.eup %1724  ;;  %v16_v14 = vstv %s2171_s10 }
0x1e20   :  { %1286 = vrot.lane.b32.xlu0 %v1725_v15, %s1734_s27  ;;  %v1737_v15 = vmov 0   ;;  %17 = vst [vmem:[#allocation6] sm:$0x1] %v16_v14 }
0x1e21   :  { %v1727_v4 = vpop.eup %1726  ;;  %1600 = vset.pattern.permute.xlu0 %v1737_v15  ;;  %1599 = vset.pattern.permute.xlu2 %v1737_v15 }
0x1e22   :  { %v1267_v21 = vadd.f32 1.0, %v1727_v4  ;;  %1431 = vperm.xlu2 %1599, %v1425_v40  }
0x1e24   :  { %1728 = vrcp.f32 %v1267_v21  ;;  %v1279_v43 = vand.u32 2147483648, %v1267_v21  ;;  %vm1273_vm3 = vweird.f32 %v1267_v21  ;;  %v1277_v29 = vand.u32 2147483647, %v1267_v21 }
0x1e26   :  { %v1280_v30 = vor.u32 1.1754944e-38, %v1279_v43  ;;  %vm1278_vm5 = vcmp.eq.f32.partialorder %v1277_v29, 8.507059e+37 }
0x1e27   :  { %v1467_v4 = vld [vmem:[#allocation6] sm:$0x1] }
0x1e28   :  { %918 = vrot.lane.b32.xlu0 %v2017_v57, %s1735_s28  ;;  %v1589_v57 = vld [vmem:[%s2168_s7] sm:$0xff] }
0x1e29   :  { %1363 = vmatpush.bf16.msrb.mxu0 %v1589_v57 }
0x1e2a   :  { %v1729_v23 = vpop.eup %1728  ;;  %1441 = vperm.xlu2 %1599, %v1427_v18  }
0x1e2b   :  { %v1269_v24 = vmul.f32 %v1729_v23, %v1267_v21  ;;  %vm1274_vm2 = vweird.f32 %v1729_v23  ;;  %v1428_v21 = vld [vmem:[%s2170_s9 + $0x18] sm:$0xff] }
0x1e2c   :  { %vm1275_vm4 = vmor %vm1273_vm3, %vm1274_vm2 }
0x1e30   :  { %1046 = vrot.lane.b32.xlu0 %v2044_v61, %s1735_s28  ;;  %v1270_v61 = vsub.f32 1.0, %v1269_v24 }
0x1e32   :  { %v1271_v25 = vmul.f32 %v1729_v23, %v1270_v61  ;;  %1446 = vperm.xlu2 %1599, %v1428_v21  }
0x1e34   :  { %v1272_v27 = vadd.f32 %v1729_v23, %v1271_v25 }
0x1e36   :  { %v1276_v8 = vsel %vm1275_vm4, %v1729_v23, %v1272_v27 }
0x1e37   :  { %v1281_v16 = vsel %vm1278_vm5, %v1280_v30, %v1276_v8 }
0x1e38   :  { %1238 = vrot.lane.b32.xlu0 %v1236_v63, %s1735_s28  ;;  %v1284_v37 = vmul.f32 %v1281_v16, %v2092_v60 }
0x1e7c   :  { %v1432_v43 = vpop.permute.xlu2 %1431 }
0x1e84   :  { %v1442_v8 = vpop.permute.xlu2 %1441 }
0x1e92   :  { %v1287_v10 = vpop.permute.xlu0 %1286 }
0x1e93   :  { %v1289_v5 = vmul.f32 %v1287_v10, %v1281_v16 }
0x1e95   :  { %1291 = vrot.lane.b32.xlu1 %v1289_v5, %s1735_s28 }
0x1e9a   :  { %v919_v19 = vpop.permute.xlu0 %918 }
0x1e9b   :  { %921 = vst.msk [vmem:[#allocation3 + $0x8] sm:$0xff] %vm45_vm0, %v919_v19 }
0x1ea2   :  { %v1047_v20 = vpop.permute.xlu0 %1046  ;;  %v1313_v33 = vld [vmem:[#allocation3 + $0x8] sm:$0xff] }
0x1ea3   :  { %1049 = vst.msk [vmem:[#allocation3 + $0x18] sm:$0xff] %vm45_vm0, %v1047_v20  ;;  %v1320_v34 = vpack.c.bf16 %v1313_v33, %v1312_v32 }
0x1ea5   :  { %1574 = vmatmul.msk.bf16.vlgmr.msrb.gmra.mxu0 %vm45_vm0, %v1320_v34  ;;  %v1447_v34 = vpop.permute.xlu2 %1446 }
0x1eaa   :  { %v1239_v35 = vpop.permute.xlu0 %1238  ;;  %v1315_v17 = vld [vmem:[#allocation3 + $0x18] sm:$0xff] }
0x1eab   :  { %1241 = vst.msk [vmem:[#allocation3 + $0x30] sm:$0xff] %vm45_vm0, %v1239_v35  ;;  %v1321_v26 = vpack.c.bf16 %v1315_v17, %v1314_v36 }
0x1eb2   :  { %v1318_v63 = vld [vmem:[#allocation3 + $0x30] sm:$0xff] }
0x1eb5   :  { %1575 = vmatmul.msk.bf16.gmra.mxu0 %vm45_vm0, %v1321_v26 }
0x1f07   :  { %v1292_v39 = vpop.permute.xlu1 %1291 }
0x1f08   :  { %v1294_v42 = vadd.f32 %v1292_v39, %v1284_v37 }
0x1f0a   :  { %1730 = vtanh.f32 %v1294_v42  ;;  %1308 = vrot.lane.b32.xlu0 %v1294_v42, %s1736_s3 }
0x1f10   :  { %v1731_v45 = vpop.eup %1730 }
0x1f11   :  { %1297 = vrot.lane.b32.xlu1 %v1731_v45, %s1734_s27 }
0x1f12   :  { %1436 = vperm.xlu0 %1600, %v1426_v3  }
0x1f19   :  { %1110 = vrot.lane.b32.xlu1 %v2063_v47, %s1735_s28  ;;  %v1603_v47 = vld [vmem:[%s2169_s8] ss:$0 sm:$0xff] }
0x1f1a   :  { %1470 = vperm.xlu0 %1600, %v1467_v4  }
0x1f22   :  { %v1365_v38 = vpop.f32.mrf.mxu0 }
0x1f23   :  { %v1366_v53 = vadd.f32 %v1603_v47, %v1365_v38 }
0x1f25   :  { %v1385_v55 = vmax.f32 %v1366_v53, 0.0 }
0x1f2a   :  { %v1367_v54 = vpop.f32.mrf.mxu0 }
0x1f2b   :  { %v1368_v56 = vadd.f32 %v1603_v47, %v1367_v54 }
0x1f2d   :  { %v1386_v11 = vmax.f32 %v1368_v56, 0.0 }
0x1f32   :  { %v1370_v44 = vpop.f32.mrf.mxu0 }
0x1f33   :  { %v1371_v58 = vadd.f32 %v1603_v47, %v1370_v44 }
0x1f35   :  { %v1387_v59 = vmax.f32 %v1371_v58, 0.0 }
0x1f3a   :  { %v1372_v9 = vpop.f32.mrf.mxu0 }
0x1f3b   :  { %v1373_v60 = vadd.f32 %v1603_v47, %v1372_v9 }
0x1f3d   :  { %v1388_v1 = vmax.f32 %v1373_v60, 0.0 }
0x1f7c   :  { %v1309_v46 = vpop.permute.xlu0 %1308 }
0x1f7d   :  { %1311 = vst.msk [vmem:[#allocation5 + $0x8] sm:$0xff] %vm45_vm0, %v1309_v46 }
0x1f83   :  { %v1298_v41 = vpop.permute.xlu1 %1297 }
0x1f84   :  { %v1300_v48 = vmul.f32 %v1298_v41, %v1281_v16  ;;  %v1437_v30 = vpop.permute.xlu0 %1436 }
0x1f86   :  { %1302 = vrot.lane.b32.xlu1 %v1300_v48, %s1735_s28 }
0x1f8b   :  { %v1111_v49 = vpop.permute.xlu1 %1110 }
0x1f8c   :  { %1113 = vst.msk [vmem:[#allocation3 + $0x20] sm:$0xff] %vm45_vm0, %v1111_v49  ;;  %v1471_v48 = vpop.permute.xlu0 %1470 }
0x1f93   :  { %v1316_v50 = vld [vmem:[#allocation3 + $0x20] sm:$0xff] }
0x1f94   :  { %v1322_v52 = vpack.c.bf16 %v1317_v51, %v1316_v50  ;;  %v1473_v50 = vperm.slane %v1471_v48, 0 }
0x1f96   :  { %1576 = vmatmul.msk.bf16.gmra.mxu0 %vm45_vm0, %v1322_v52 }
0x1fbb   :  { %1393 = vxpose.xlu1.b32.start [1/8] (short) (narrow) %v1385_v55, 32 }
0x1fc3   :  { %1394 = vxpose.xlu1.b32.cont [2/8] (short) (narrow) %v1386_v11, 32 }
0x1fcb   :  { %1395 = vxpose.xlu1.b32.cont [3/8] (short) (narrow) %v1387_v59, 32 }
0x1fd3   :  { %1396 = vxpose.xlu1.b32.cont [4/8] (short) (narrow) %v1388_v1, 32 }
0x1ff8   :  { %v1303_v62 = vpop.permute.xlu1 %1302 }
0x1ff9   :  { %1305 = vst.msk [vmem:[#allocation3 + $0x38] sm:$0xff] %vm45_vm0, %v1303_v62 }
0x1ffa   :  { %1306 = vst.msk [vmem:[#allocation4 + $0x8] sm:$0xff] %vm45_vm0, %v1303_v62 }
0x2000   :  { %v1319_v0 = vld [vmem:[#allocation3 + $0x38] sm:$0xff] }
0x2001   :  { %v1323_v2 = vpack.c.bf16 %v1319_v0, %v1318_v63 }
0x2003   :  { %1577 = vmatmul.msk.bf16.gmra.mxu0 %vm45_vm0, %v1323_v2  ;;  %vm1453_vm0 = vcmask 523264  }
0x2013   :  { %v1375_v6 = vpop.f32.mrf.mxu0 }
0x2014   :  { %v1376_v7 = vadd.f32 %v1603_v47, %v1375_v6 }
0x2016   :  { %v1389_v13 = vmax.f32 %v1376_v7, 0.0 }
0x2018   :  { %1397 = vxpose.xlu1.b32.cont [5/8] (short) (narrow) %v1389_v13, 32 }
0x201b   :  { %v1377_v22 = vpop.f32.mrf.mxu0 }
0x201c   :  { %v1378_v31 = vadd.f32 %v1603_v47, %v1377_v22 }
0x201e   :  { %v1390_v12 = vmax.f32 %v1378_v31, 0.0 }
0x2020   :  { %1398 = vxpose.xlu1.b32.cont [6/8] (short) (narrow) %v1390_v12, 32 }
0x2080   :  { %v1380_v28 = vpop.f32.mrf.mxu0 }
0x2081   :  { %v1381_v23 = vadd.f32 %v1603_v47, %v1380_v28 }
0x2083   :  { %v1391_v57 = vmax.f32 %v1381_v23, 0.0 }
0x2085   :  { %1399 = vxpose.xlu1.b32.cont [7/8] (short) (narrow) %v1391_v57, 32 }
0x2088   :  { %v1382_v24 = vpop.f32.mrf.mxu0 }
0x2089   :  { %v1383_v61 = vadd.f32 %v1603_v47, %v1382_v24 }
0x208b   :  { %v1392_v25 = vmax.f32 %v1383_v61, 0.0 }
0x208d   :  { %1400 = vxpose.xlu1.b32.end [8/8] (short) (narrow) %v1392_v25, 32 }
0x20f9   :  { %v1409_v27 = vpop.trf.xlu1 }
0x20fa   :  { %v1449_v5 = vmul.f32 %v1432_v43, %v1409_v27 }
0x20fc   :  { %v1454_v32 = vsel %vm1453_vm0, %v1449_v5, 0.0 }
0x2101   :  { %v1410_v29 = vpop.trf.xlu1 }
0x2102   :  { %v1450_v16 = vmul.f32 %v1437_v30, %v1410_v29 }
0x2104   :  { %v1455_v20 = vsel %vm1453_vm0, %v1450_v16, 0.0 }
0x2105   :  { %v1456_v35 = vadd.f32 %v1455_v20, %v1454_v32 }
0x2109   :  { %v1411_v10 = vpop.trf.xlu1 }
0x210a   :  { %v1451_v19 = vmul.f32 %v1442_v8, %v1411_v10 }
0x210c   :  { %v1457_v33 = vsel %vm1453_vm0, %v1451_v19, 0.0 }
0x210d   :  { %v1458_v26 = vadd.f32 %v1457_v33, %v1456_v35 }
0x2111   :  { %v1412_v17 = vpop.trf.xlu1 }
0x2112   :  { %v1452_v36 = vmul.f32 %v1447_v34, %v1412_v17 }
0x2114   :  { %v1459_v37 = vsel %vm1453_vm0, %v1452_v36, 0.0 }
0x2115   :  { %v1460_v39 = vadd.f32 %v1459_v37, %v1458_v26 }
0x2117   :  { %v1461_v42 = vrot.slane %v1460_v39, 4 }
0x2119   :  { %v1462_v45 = vadd.f32 %v1461_v42, %v1460_v39 }
0x211b   :  { %v1463_v46 = vrot.slane %v1462_v45, 2 }
0x211d   :  { %v1464_v41 = vadd.f32 %v1463_v46, %v1462_v45 }
0x211f   :  { %v1465_v49 = vrot.slane %v1464_v41, 1 }
0x2121   :  { %v1466_v51 = vadd.f32 %v1465_v49, %v1464_v41 }
0x2123   :  { %v1474_v52 = vadd.f32 %v1473_v50, %v1466_v51 }
0x2125   :  { %v1475_v38 = vmax.f32 %v1474_v52, 0.0 }
0x2127   :  { %1477 = vst.msk [vmem:[%s2172_s11] sm:$0x1] %vm1476_vm6, %v1475_v38 }

</bundles_post_ra>
